<compile_context>
chip_gen: v6e
topology: v6e:2x2x1
jax: 0.10.0
libtpu: 0.0.40
codegen_flags: <defaults>
</compile_context>

<pallas_src>
import functools

import jax
import jax.numpy as jnp
import numpy as np
from jax.experimental import pallas as pl
from jax.experimental.pallas import tpu as pltpu

_VMEM_LIMIT = 64 * 1024 * 1024


def _fit(dim, tile):
    """Use `tile` if it evenly tiles `dim`, otherwise fall back to the full dim."""
    return tile if (tile <= dim and dim % tile == 0) else dim


def _pick_group(nh, d, max_cols=512):
    """Largest G dividing nh with G*d <= max_cols (MXU-friendly N tile)."""
    g = max(1, min(nh, max_cols // max(d, 1)))
    while g > 1 and nh % g:
        g -= 1
    return g


# --------------------- fused QKV projection + RoPE kernel -------------------- #
def _qkv_rope_kernel(x_ref, w_ref, cos_ref, sin_ref, o_ref, acc_ref, *,
                     group, head_dim, num_rope_heads):
    # program_id / num_programs only at kernel top level (never inside pl.when).
    hg = pl.program_id(0)
    kb = pl.program_id(3)
    last_kb = pl.num_programs(3) - 1

    @pl.when(kb == 0)
    def _():
        acc_ref[...] = jnp.zeros_like(acc_ref)

    acc_ref[...] += jnp.dot(x_ref[0], w_ref[0],
                            preferred_element_type=jnp.float32)

    @pl.when(kb == last_kb)
    def _():
        half = head_dim // 2
        cos = cos_ref[0]
        sinf = sin_ref[0]
        for g in range(group):                      # static unrolled loop
            head = hg * group + g
            sub = acc_ref[:, g * head_dim:(g + 1) * head_dim]
            is_rope = head < num_rope_heads

            @pl.when(is_rope)
            def _(sub=sub, g=g):
                # rotate_half(x)*sin == concat(x2, x1) * (sign-folded sin)
                rot = jnp.concatenate([sub[:, half:], sub[:, :half]], axis=-1)
                o_ref[g, 0] = (sub * cos + rot * sinf).astype(o_ref.dtype)

            @pl.when(jnp.logical_not(is_rope))
            def _(sub=sub, g=g):
                o_ref[g, 0] = sub.astype(o_ref.dtype)


def pallas_qkv_rope(x, w_grouped, cos, sin_folded, *, group, head_dim,
                    num_rope_heads, out_dtype, seq_tile, k_tile, vmem_limit):
    B, S, K = x.shape
    NG, K2, GD = w_grouped.shape
    assert K == K2 and GD == group * head_dim
    NH = NG * group
    ts = _fit(S, seq_tile)
    tk = _fit(K, k_tile)
    kernel = functools.partial(_qkv_rope_kernel, group=group,
                               head_dim=head_dim,
                               num_rope_heads=num_rope_heads)
    return pl.pallas_call(
        kernel,
        out_shape=jax.ShapeDtypeStruct((NH, B, S, head_dim), out_dtype),
        grid=(NG, B, S // ts, K // tk),
        in_specs=[
            pl.BlockSpec((1, ts, tk), lambda hg, b, sb, kb: (b, sb, kb)),
            pl.BlockSpec((1, tk, GD), lambda hg, b, sb, kb: (hg, kb, 0)),
            pl.BlockSpec((1, ts, head_dim), lambda hg, b, sb, kb: (b, sb, 0)),
            pl.BlockSpec((1, ts, head_dim), lambda hg, b, sb, kb: (b, sb, 0)),
        ],
        out_specs=pl.BlockSpec((group, 1, ts, head_dim),
                               lambda hg, b, sb, kb: (hg, b, sb, 0)),
        scratch_shapes=[pltpu.VMEM((ts, GD), jnp.float32)],
        compiler_params=pltpu.CompilerParams(
            dimension_semantics=("parallel", "parallel", "parallel", "arbitrary"),
            vmem_limit_bytes=vmem_limit),
    )(x, w_grouped, cos, sin_folded)


# ---------------- attention with explicit probability output ---------------- #
def _attn_weights_kernel(q_ref, k_ref, v_ref, mask_ref, o_ref, w_ref):
    q = q_ref[0, 0]                     # (tq, D) -- scaling pre-folded into wq
    k = k_ref[0, 0]                     # (S, D)
    v = v_ref[0, 0]                     # (S, D)

    s = jax.lax.dot_general(q, k, (((1,), (1,)), ((), ())),
                            preferred_element_type=jnp.float32)
    s = s + mask_ref[0, 0]
    s = s - jnp.max(s, axis=-1, keepdims=True)
    p = jnp.exp(s)
    p = p / jnp.sum(p, axis=-1, keepdims=True)      # exact normalization

    o = jnp.dot(p.astype(v.dtype), v, preferred_element_type=jnp.float32)
    o_ref[0, 0] = o.astype(o_ref.dtype)
    w_ref[0, 0] = p.astype(w_ref.dtype)


def pallas_attention_with_weights(qkv, mask, num_heads, num_kv_heads, *,
                                  out_dtype, q_tile, vmem_limit):
    NH, B, S, D = qkv.shape
    H, KVH = num_heads, num_kv_heads
    n_rep = H // KVH
    tq = _fit(S, q_tile)
    # Grid (B, q-block, H): mask block index is constant across the inner H
    # axis, so the (B,1,S,S) mask is DMA'd H-times less.
    return pl.pallas_call(
        _attn_weights_kernel,
        out_shape=(
            jax.ShapeDtypeStruct((H, B, S, D), out_dtype),   # attention output
            jax.ShapeDtypeStruct((B, H, S, S), out_dtype),   # attention probs
        ),
        grid=(B, S // tq, H),
        in_specs=[
            pl.BlockSpec((1, 1, tq, D), lambda b, qi, h: (h, b, qi, 0)),
            pl.BlockSpec((1, 1, S, D),
                         lambda b, qi, h: (H + h // n_rep, b, 0, 0)),
            pl.BlockSpec((1, 1, S, D),
                         lambda b, qi, h: (H + KVH + h // n_rep, b, 0, 0)),
            pl.BlockSpec((1, 1, tq, S), lambda b, qi, h: (b, 0, qi, 0)),
        ],
        out_specs=(
            pl.BlockSpec((1, 1, tq, D), lambda b, qi, h: (h, b, qi, 0)),
            pl.BlockSpec((1, 1, tq, S), lambda b, qi, h: (b, h, qi, 0)),
        ),
        compiler_params=pltpu.CompilerParams(
            dimension_semantics=("parallel", "parallel", "parallel"),
            vmem_limit_bytes=vmem_limit),
    )(qkv, qkv, qkv, mask)


# -------------------- flash attention (no weights output) -------------------- #
def _flash_attn_kernel(q_ref, k_ref, v_ref, mask_ref, o_ref,
                       m_ref, l_ref, acc_ref, *, causal, tq, tkv):
    qi = pl.program_id(2)
    ki = pl.program_id(3)
    last_ki = pl.num_programs(3) - 1

    @pl.when(ki == 0)
    def _():
        m_ref[...] = jnp.full(m_ref.shape, -1e30, jnp.float32)   # finite init
        l_ref[...] = jnp.zeros_like(l_ref)
        acc_ref[...] = jnp.zeros_like(acc_ref)

    def _compute():
        q = q_ref[0, 0]                                         # pre-scaled
        s = jax.lax.dot_general(q, k_ref[0, 0], (((1,), (1,)), ((), ())),
                                preferred_element_type=jnp.float32)
        s = s + mask_ref[0, 0]
        m_prev = m_ref[...]                                     # (tq, D) lane-dense
        m_new = jnp.maximum(m_prev, jnp.max(s, axis=-1, keepdims=True))
        corr = jnp.exp(m_prev - m_new)
        p = jnp.exp(s - m_new[:, :1])
        l_ref[...] = corr * l_ref[...] + jnp.sum(p, axis=-1, keepdims=True)
        acc_ref[...] = corr * acc_ref[...] + jnp.dot(
            p.astype(v_ref.dtype), v_ref[0, 0],
            preferred_element_type=jnp.float32)
        m_ref[...] = m_new

    if causal:
        # Skip fully-masked (future) KV tiles: their contribution is exactly 0.
        pl.when(ki * tkv <= qi * tq + (tq - 1))(_compute)
    else:
        _compute()

    @pl.when(ki == last_ki)
    def _():
        o_ref[0, 0] = (acc_ref[...] / l_ref[...]).astype(o_ref.dtype)


def pallas_flash_attention(qkv, mask, num_heads, num_kv_heads, *, causal,
                           out_dtype, q_tile, kv_tile, vmem_limit):
    NH, B, S, D = qkv.shape
    H, KVH = num_heads, num_kv_heads
    n_rep = H // KVH
    tq = _fit(S, q_tile)
    tkv = _fit(S, kv_tile)

    if causal:
        def kv_block(qi, ki):
            # Clamp skipped (future) tiles to the last needed block so no new
            # DMA is issued for them.
            return jnp.minimum(ki, (qi * tq + tq - 1) // tkv)
    else:
        def kv_block(qi, ki):
            return ki

    kernel = functools.partial(_flash_attn_kernel, causal=causal, tq=tq, tkv=tkv)
    return pl.pallas_call(
        kernel,
        out_shape=jax.ShapeDtypeStruct((H, B, S, D), out_dtype),
        grid=(B, H, S // tq, S // tkv),
        in_specs=[
            pl.BlockSpec((1, 1, tq, D), lambda b, h, qi, ki: (h, b, qi, 0)),
            pl.BlockSpec((1, 1, tkv, D),
                         lambda b, h, qi, ki: (H + h // n_rep, b,
                                               kv_block(qi, ki), 0)),
            pl.BlockSpec((1, 1, tkv, D),
                         lambda b, h, qi, ki: (H + KVH + h // n_rep, b,
                                               kv_block(qi, ki), 0)),
            pl.BlockSpec((1, 1, tq, tkv),
                         lambda b, h, qi, ki: (b, 0, qi, kv_block(qi, ki))),
        ],
        out_specs=pl.BlockSpec((1, 1, tq, D), lambda b, h, qi, ki: (h, b, qi, 0)),
        scratch_shapes=[
            pltpu.VMEM((tq, D), jnp.float32),   # m (lane-replicated)
            pltpu.VMEM((tq, D), jnp.float32),   # l (lane-replicated)
            pltpu.VMEM((tq, D), jnp.float32),   # acc
        ],
        compiler_params=pltpu.CompilerParams(
            dimension_semantics=("parallel", "parallel", "parallel", "arbitrary"),
            vmem_limit_bytes=vmem_limit),
    )(qkv, qkv, qkv, mask)


# ----------- o_proj: per-head contributions + accumulated full output -------- #
def _oproj_heads_kernel(a_ref, w_ref, o_ref, hout_ref, acc_ref):
    h = pl.program_id(3)
    last_h = pl.num_programs(3) - 1

    @pl.when(h == 0)
    def _():
        acc_ref[...] = jnp.zeros_like(acc_ref)

    contrib = jnp.dot(a_ref[0, 0], w_ref[0], preferred_element_type=jnp.float32)
    acc_ref[...] += contrib
    hout_ref[0, 0] = contrib.astype(hout_ref.dtype)

    @pl.when(h == last_h)
    def _():
        o_ref[0] = acc_ref[...].astype(o_ref.dtype)


def _oproj_kernel(a_ref, w_ref, o_ref, acc_ref):
    h = pl.program_id(3)
    last_h = pl.num_programs(3) - 1

    @pl.when(h == 0)
    def _():
        acc_ref[...] = jnp.zeros_like(acc_ref)

    acc_ref[...] += jnp.dot(a_ref[0, 0], w_ref[0],
                            preferred_element_type=jnp.float32)

    @pl.when(h == last_h)
    def _():
        o_ref[0] = acc_ref[...].astype(o_ref.dtype)


def pallas_oproj(attn, wo_heads, *, with_heads, out_dtype, head_dtype,
                 seq_tile, col_tile, vmem_limit):
    H, B, S, D = attn.shape
    H2, D2, HID = wo_heads.shape
    assert H == H2 and D == D2
    ts = _fit(S, seq_tile)
    tc = _fit(HID, col_tile)
    grid = (B, S // ts, HID // tc, H)      # heads = reduction axis (last)
    in_specs = [
        pl.BlockSpec((1, 1, ts, D), lambda b, sb, cb, h: (h, b, sb, 0)),
        pl.BlockSpec((1, D, tc), lambda b, sb, cb, h: (h, 0, cb)),
    ]
    out_spec_sum = pl.BlockSpec((1, ts, tc), lambda b, sb, cb, h: (b, sb, cb))
    params = pltpu.CompilerParams(
        dimension_semantics=("parallel", "parallel", "parallel", "arbitrary"),
        vmem_limit_bytes=vmem_limit)
    scratch = [pltpu.VMEM((ts, tc), jnp.float32)]
    if with_heads:
        out, heads = pl.pallas_call(
            _oproj_heads_kernel,
            out_shape=(jax.ShapeDtypeStruct((B, S, HID), out_dtype),
                       jax.ShapeDtypeStruct((H, B, S, HID), head_dtype)),
            grid=grid,
            in_specs=in_specs,
            out_specs=(out_spec_sum,
                       pl.BlockSpec((1, 1, ts, tc),
                                    lambda b, sb, cb, h: (h, b, sb, cb))),
            scratch_shapes=scratch,
            compiler_params=params,
        )(attn, wo_heads)
        return out, heads
    out = pl.pallas_call(
        _oproj_kernel,
        out_shape=jax.ShapeDtypeStruct((B, S, HID), out_dtype),
        grid=grid,
        in_specs=in_specs,
        out_specs=out_spec_sum,
        scratch_shapes=scratch,
        compiler_params=params,
    )(attn, wo_heads)
    return out, None


# ------------------------------ module wrapper ------------------------------ #
class GetHeadsLlamaAttentionPallas:
    """Pallas equivalent of GetHeadsLlamaAttention.forward (eager attention)."""

    def __init__(self, hidden_size, num_heads, num_kv_heads, head_dim,
                 wqT, wkT, wvT, woT,
                 h_I=(), alpha=(), intervention=False, head_out=True,
                 bf16_intermediates=True, causal=True,
                 seq_tile=512, k_tile=1024, q_tile=512, kv_tile=512,
                 weights_q_tile=128, col_tile=1024, vmem_limit=_VMEM_LIMIT):
        self.hidden_size = hidden_size
        self.num_heads = num_heads
        self.num_kv_heads = num_kv_heads
        self.head_dim = head_dim
        self.scaling = head_dim ** -0.5
        self.h_I, self.alpha = list(h_I), list(alpha)
        self.intervention = intervention
        self.head_out = head_out
        self.head_output = None
        self.bf16_intermediates = bf16_intermediates
        self.causal = causal
        self.seq_tile, self.k_tile = seq_tile, k_tile
        self.q_tile, self.kv_tile = q_tile, kv_tile
        self.weights_q_tile, self.col_tile = weights_q_tile, col_tile
        self.vmem_limit = vmem_limit

        H, KVH, D = num_heads, num_kv_heads, head_dim
        NH = H + 2 * KVH
        self.num_rope_heads = H + KVH            # Q heads + K heads get RoPE
        param_dtype = jnp.bfloat16 if bf16_intermediates else wqT.dtype

        # Fold 1/sqrt(d) into the Q projection weights (perf-review item).
        wq_h = (wqT * self.scaling).reshape(hidden_size, H, D).transpose(1, 0, 2)
        wk_h = wkT.reshape(hidden_size, KVH, D).transpose(1, 0, 2)
        wv_h = wvT.reshape(hidden_size, KVH, D).transpose(1, 0, 2)
        w_all = jnp.concatenate([wq_h, wk_h, wv_h], axis=0)      # (NH, K, D)

        # Group G heads per grid step: (NH/G, K, G*D).  Done once at init.
        G = _pick_group(NH, D)
        self.group = G
        self.w_fused = (w_all.reshape(NH // G, G, hidden_size, D)
                        .transpose(0, 2, 1, 3)
                        .reshape(NH // G, hidden_size, G * D)).astype(param_dtype)
        # Head-sliced o_proj weight: (H, head_dim, hidden).
        self.wo_heads = woT.reshape(H, D, hidden_size).astype(param_dtype)

    def __call__(self, hidden_states, position_embeddings, attention_mask,
                 output_attentions=True):
        # TODO(synk): attention_mask=None / KV-cache / dropout paths not modeled.
        cos, sin = position_embeddings
        half = self.head_dim // 2
        # Fold the rotate_half sign into sin once (tiny (B,S,D) op) so the
        # kernel uses a plain lane rotation.
        sin_folded = jnp.concatenate([-sin[..., :half], sin[..., half:]],
                                     axis=-1).astype(jnp.float32)
        cos32 = cos.astype(jnp.float32)
        mask = attention_mask.astype(jnp.float32)

        idt = jnp.bfloat16 if self.bf16_intermediates else hidden_states.dtype
        x = hidden_states.astype(self.w_fused.dtype)

        qkv = pallas_qkv_rope(
            x, self.w_fused, cos32, sin_folded,
            group=self.group, head_dim=self.head_dim,
            num_rope_heads=self.num_rope_heads, out_dtype=idt,
            seq_tile=self.seq_tile, k_tile=self.k_tile,
            vmem_limit=self.vmem_limit)

        if output_attentions:
            attn, attn_weights = pallas_attention_with_weights(
                qkv, mask, self.num_heads, self.num_kv_heads,
                out_dtype=idt, q_tile=self.weights_q_tile,
                vmem_limit=self.vmem_limit)
        else:
            attn = pallas_flash_attention(
                qkv, mask, self.num_heads, self.num_kv_heads,
                causal=self.causal, out_dtype=idt,
                q_tile=self.q_tile, kv_tile=self.kv_tile,
                vmem_limit=self.vmem_limit)
            attn_weights = None

        out, heads = pallas_oproj(
            attn, self.wo_heads, with_heads=self.head_out,
            out_dtype=hidden_states.dtype, head_dtype=idt,
            seq_tile=self.seq_tile, col_tile=self.col_tile,
            vmem_limit=self.vmem_limit)
        self.head_output = heads

        if self.intervention and self.head_out:
            for h_i, alph in zip(self.h_I, self.alpha):
                out = out + heads[h_i].astype(out.dtype) * alph
        return out, attn_weights

    def get_head_output(self):
        return self.head_output


# --------------------------- pure-JAX reference ----------------------------- #
def reference_forward(x, cos, sin, mask, wqT, wkT, wvT, woT,
                      num_heads, num_kv_heads, head_dim,
                      h_I, alpha, intervention):
    B, S, hidden = x.shape
    scaling = head_dim ** -0.5
    x2d = x.reshape(B * S, hidden)
    q = (x2d @ wqT).reshape(B, S, num_heads, head_dim).transpose(0, 2, 1, 3)
    k = (x2d @ wkT).reshape(B, S, num_kv_heads, head_dim).transpose(0, 2, 1, 3)
    v = (x2d @ wvT).reshape(B, S, num_kv_heads, head_dim).transpose(0, 2, 1, 3)

    def rot_half(t):
        h = t.shape[-1] // 2
        return jnp.concatenate([-t[..., h:], t[..., :h]], axis=-1)

    c = cos[:, None, :, :]
    s = sin[:, None, :, :]
    q = q * c + rot_half(q) * s
    k = k * c + rot_half(k) * s

    n_rep = num_heads // num_kv_heads
    k_r = jnp.repeat(k, n_rep, axis=1)
    v_r = jnp.repeat(v, n_rep, axis=1)
    scores = jnp.einsum('bhqd,bhkd->bhqk', q, k_r) * scaling + mask
    w = jax.nn.softmax(scores.astype(jnp.float32), axis=-1).astype(x.dtype)
    attn = jnp.einsum('bhqk,bhkd->bhqd', w.astype(q.dtype), v_r)
    attn_flat = attn.transpose(0, 2, 1, 3).reshape(B, S, num_heads * head_dim)

    heads = []
    for i in range(num_heads):
        heads.append(attn_flat[:, :, i * head_dim:(i + 1) * head_dim]
                     @ woT[i * head_dim:(i + 1) * head_dim, :])
    out = attn_flat @ woT
    if intervention:
        for h_i, a in zip(h_I, alpha):
            out = out + heads[h_i] * a
    return out, w, jnp.stack(heads)


def _np32(x):
    return np.asarray(jnp.asarray(x, jnp.float32))


# ----------------------------------- main ----------------------------------- #
if __name__ == "__main__":
    B, S = 2, 256
    HIDDEN = 256
    NUM_HEADS = 2
    NUM_KV_HEADS = 1
    HEAD_DIM = HIDDEN // NUM_HEADS  # 128 (lane-aligned)

    key = jax.random.PRNGKey(0)
    kx, kq, kk, kv, ko = jax.random.split(key, 5)

    hidden_states = jax.random.normal(kx, (B, S, HIDDEN), dtype=jnp.float32)
    # weights stored transposed (in_features, out_features) so x @ W
    wqT = 0.05 * jax.random.normal(kq, (HIDDEN, NUM_HEADS * HEAD_DIM), jnp.float32)
    wkT = 0.05 * jax.random.normal(kk, (HIDDEN, NUM_KV_HEADS * HEAD_DIM), jnp.float32)
    wvT = 0.05 * jax.random.normal(kv, (HIDDEN, NUM_KV_HEADS * HEAD_DIM), jnp.float32)
    woT = 0.05 * jax.random.normal(ko, (NUM_HEADS * HEAD_DIM, HIDDEN), jnp.float32)

    # rotary position embeddings (Llama style), shape (B, S, head_dim)
    inv_freq = 1.0 / (10000.0 ** (np.arange(0, HEAD_DIM, 2) / HEAD_DIM))
    freqs = np.outer(np.arange(S), inv_freq)               # (S, D/2)
    emb = np.concatenate([freqs, freqs], axis=-1)          # (S, D)
    cos = jnp.broadcast_to(jnp.asarray(np.cos(emb), jnp.float32), (B, S, HEAD_DIM))
    sin = jnp.broadcast_to(jnp.asarray(np.sin(emb), jnp.float32), (B, S, HEAD_DIM))

    # additive causal attention mask, (B, 1, S, S)
    i_idx = np.arange(S)[:, None]
    j_idx = np.arange(S)[None, :]
    causal = np.where(j_idx <= i_idx, 0.0, -1e9).astype(np.float32)
    attention_mask = jnp.broadcast_to(jnp.asarray(causal), (B, 1, S, S))

    h_I = [1]
    alpha = [0.5]

    ref_out, ref_w, ref_heads = reference_forward(
        hidden_states, cos, sin, attention_mask, wqT, wkT, wvT, woT,
        NUM_HEADS, NUM_KV_HEADS, HEAD_DIM, h_I, alpha, intervention=True)

    # ---- exact-precision (f32) module: strict correctness check ----
    module_f32 = GetHeadsLlamaAttentionPallas(
        HIDDEN, NUM_HEADS, NUM_KV_HEADS, HEAD_DIM,
        wqT, wkT, wvT, woT,
        h_I=h_I, alpha=alpha, intervention=True, head_out=True,
        bf16_intermediates=False,
        # small tiles so the test exercises multi-block grids + accumulators
        seq_tile=128, k_tile=128, q_tile=128, kv_tile=128,
        weights_q_tile=128, col_tile=128)

    out, attn_weights = module_f32(hidden_states, (cos, sin), attention_mask,
                                   output_attentions=True)
    head_outputs = module_f32.get_head_output()
    out_flash, _ = module_f32(hidden_states, (cos, sin), attention_mask,
                              output_attentions=False)
    jax.block_until_ready((out, attn_weights, head_outputs, out_flash))

    np.testing.assert_allclose(_np32(out), _np32(ref_out), rtol=2e-3, atol=2e-3)
    np.testing.assert_allclose(_np32(out_flash), _np32(ref_out), rtol=2e-3, atol=2e-3)
    np.testing.assert_allclose(_np32(attn_weights), _np32(ref_w), rtol=2e-3, atol=2e-3)
    np.testing.assert_allclose(_np32(head_outputs), _np32(ref_heads), rtol=2e-3, atol=2e-3)

    # ---- bf16-intermediate module (perf configuration): loose check ----
    module_bf16 = GetHeadsLlamaAttentionPallas(
        HIDDEN, NUM_HEADS, NUM_KV_HEADS, HEAD_DIM,
        wqT, wkT, wvT, woT,
        h_I=h_I, alpha=alpha, intervention=True, head_out=True,
        bf16_intermediates=True)

    out_b, w_b = module_bf16(hidden_states, (cos, sin), attention_mask,
                             output_attentions=True)
    heads_b = module_bf16.get_head_output()
    out_b_flash, _ = module_bf16(hidden_states, (cos, sin), attention_mask,
                                 output_attentions=False)
    jax.block_until_ready((out_b, w_b, heads_b, out_b_flash))

    np.testing.assert_allclose(_np32(out_b), _np32(ref_out), rtol=5e-2, atol=5e-2)
    np.testing.assert_allclose(_np32(out_b_flash), _np32(ref_out), rtol=5e-2, atol=5e-2)
    np.testing.assert_allclose(_np32(w_b), _np32(ref_w), rtol=5e-2, atol=5e-2)
    np.testing.assert_allclose(_np32(heads_b), _np32(ref_heads), rtol=5e-2, atol=5e-2)

    print("KERNEL_OK")
</pallas_src>

<mosaic_0001>
module attributes {stable_mosaic.version = 11 : i64} {
  func.func @_qkv_rope_kernel(%arg0: i32, %arg1: i32, %arg2: i32, %arg3: i32, %arg4: memref<1x128x128xf32, #tpu.memory_space<vmem>>, %arg5: memref<1x128x512xf32, #tpu.memory_space<vmem>>, %arg6: memref<1x128x128xf32, #tpu.memory_space<vmem>>, %arg7: memref<1x128x128xf32, #tpu.memory_space<vmem>>, %arg8: memref<4x1x128x128xf32, #tpu.memory_space<vmem>>, %arg9: memref<128x512xf32, #tpu.memory_space<vmem>>) attributes {dimension_semantics = [#tpu.dimension_semantics<parallel>, #tpu.dimension_semantics<parallel>, #tpu.dimension_semantics<parallel>, #tpu.dimension_semantics<arbitrary>], iteration_bounds = array<i64: 1, 2, 2, 2>, scalar_prefetch = 0 : i64, scratch_operands = 1 : i64, tpu.core_type = #tpu.core_type<tc>, window_params = [{transform_indices = @transform_0, window_bounds = array<i64: 1, 128, 128>}, {transform_indices = @transform_1, window_bounds = array<i64: 1, 128, 512>}, {transform_indices = @transform_2, window_bounds = array<i64: 1, 128, 128>}, {transform_indices = @transform_3, window_bounds = array<i64: 1, 128, 128>}, {transform_indices = @transform_4, window_bounds = array<i64: 4, 1, 128, 128>}]} {
    %c0_i32 = arith.constant 0 : i32
    %0 = arith.cmpi eq, %arg3, %c0_i32 : i32
    %1 = arith.extui %0 : i1 to i32
    %c0_i32_0 = arith.constant 0 : i32
    %2 = arith.cmpi ne, %1, %c0_i32_0 : i32
    scf.if %2 {
      %cst_11 = arith.constant 0.000000e+00 : f32
      %14 = vector.broadcast %cst_11 : f32 to vector<128x512xf32>
      %c0_12 = arith.constant 0 : index
      %c0_13 = arith.constant 0 : index
      %15 = vector.load %arg9[%c0_12, %c0_13] : memref<128x512xf32, #tpu.memory_space<vmem>>, vector<128x512xf32>
      tpu.vector_store %arg9[%c0_12, %c0_13], %14 {strides = array<i32>} : memref<128x512xf32, #tpu.memory_space<vmem>>, vector<128x512xf32>,
    } else {
    }
    %c0 = arith.constant 0 : index
    %c0_1 = arith.constant 0 : index
    %3 = vector.load %arg9[%c0, %c0_1] : memref<128x512xf32, #tpu.memory_space<vmem>>, vector<128x512xf32>
    %c0_2 = arith.constant 0 : index
    %c0_3 = arith.constant 0 : index
    %c0_4 = arith.constant 0 : index
    %4 = vector.load %arg4[%c0_2, %c0_3, %c0_4] : memref<1x128x128xf32, #tpu.memory_space<vmem>>, vector<1x128x128xf32>
    %5 = vector.shape_cast %4 : vector<1x128x128xf32> to vector<128x128xf32>
    %c0_5 = arith.constant 0 : index
    %c0_6 = arith.constant 0 : index
    %c0_7 = arith.constant 0 : index
    %6 = vector.load %arg5[%c0_5, %c0_6, %c0_7] : memref<1x128x512xf32, #tpu.memory_space<vmem>>, vector<1x128x512xf32>
    %7 = vector.shape_cast %6 : vector<1x128x512xf32> to vector<128x512xf32>
    %cst = arith.constant dense<0.000000e+00> : vector<128x512xf32>
    %8 = tpu.matmul %5, %7, %cst {dimension_numbers = #tpu.dot_dimension_numbers<[1], [0], [0], [1], [0, 0, 1, 1], [], []>} : vector<128x128xf32>, vector<128x512xf32>, vector<128x512xf32> -> vector<128x512xf32>
    %9 = arith.addf %3, %8 : vector<128x512xf32>
    %c0_8 = arith.constant 0 : index
    %c0_9 = arith.constant 0 : index
    %10 = vector.load %arg9[%c0_8, %c0_9] : memref<128x512xf32, #tpu.memory_space<vmem>>, vector<128x512xf32>
    tpu.vector_store %arg9[%c0_8, %c0_9], %9 {strides = array<i32>} : memref<128x512xf32, #tpu.memory_space<vmem>>, vector<128x512xf32>,
    %c1_i32 = arith.constant 1 : i32
    %11 = arith.cmpi eq, %arg3, %c1_i32 : i32
    %12 = arith.extui %11 : i1 to i32
    %c0_i32_10 = arith.constant 0 : i32
    %13 = arith.cmpi ne, %12, %c0_i32_10 : i32
    scf.if %13 {
      %c0_11 = arith.constant 0 : index
      %c0_12 = arith.constant 0 : index
      %c0_13 = arith.constant 0 : index
      %14 = vector.load %arg6[%c0_11, %c0_12, %c0_13] : memref<1x128x128xf32, #tpu.memory_space<vmem>>, vector<1x128x128xf32>
      %15 = vector.shape_cast %14 : vector<1x128x128xf32> to vector<128x128xf32>
      %c0_14 = arith.constant 0 : index
      %c0_15 = arith.constant 0 : index
      %c0_16 = arith.constant 0 : index
      %16 = vector.load %arg7[%c0_14, %c0_15, %c0_16] : memref<1x128x128xf32, #tpu.memory_space<vmem>>, vector<1x128x128xf32>
      %17 = vector.shape_cast %16 : vector<1x128x128xf32> to vector<128x128xf32>
      %c4_i32 = arith.constant 4 : i32
      %18 = arith.muli %arg0, %c4_i32 : i32
      %c0_i32_17 = arith.constant 0 : i32
      %19 = arith.addi %18, %c0_i32_17 : i32
      %c0_18 = arith.constant 0 : index
      %c0_19 = arith.constant 0 : index
      %20 = vector.load %arg9[%c0_18, %c0_19] : memref<128x512xf32, #tpu.memory_space<vmem>>, vector<128x128xf32>
      %c3_i32 = arith.constant 3 : i32
      %21 = arith.cmpi slt, %19, %c3_i32 : i32
      %22 = arith.extui %21 : i1 to i32
      %c0_i32_20 = arith.constant 0 : i32
      %23 = arith.cmpi ne, %22, %c0_i32_20 : i32
      scf.if %23 {
        %54 = vector.extract_strided_slice %20 {offsets = [0, 64], sizes = [128, 64], strides = [1, 1]} : vector<128x128xf32> to vector<128x64xf32>
        %55 = vector.extract_strided_slice %20 {offsets = [0, 0], sizes = [128, 64], strides = [1, 1]} : vector<128x128xf32> to vector<128x64xf32>
        %56 = tpu.concatenate %54, %55 in 1 : vector<128x64xf32>, vector<128x64xf32> -> vector<128x128xf32>
        %57 = arith.mulf %20, %15 : vector<128x128xf32>
        %58 = arith.mulf %56, %17 : vector<128x128xf32>
        %59 = arith.addf %57, %58 : vector<128x128xf32>
        %c0_42 = arith.constant 0 : index
        %c0_43 = arith.constant 0 : index
        %c0_44 = arith.constant 0 : index
        %c0_45 = arith.constant 0 : index
        %60 = vector.load %arg8[%c0_42, %c0_43, %c0_44, %c0_45] : memref<4x1x128x128xf32, #tpu.memory_space<vmem>>, vector<1x1x128x128xf32>
        %61 = vector.shape_cast %60 : vector<1x1x128x128xf32> to vector<128x128xf32>
        %62 = vector.shape_cast %59 : vector<128x128xf32> to vector<1x1x128x128xf32>
        tpu.vector_store %arg8[%c0_42, %c0_43, %c0_44, %c0_45], %62 {strides = array<i32>} : memref<4x1x128x128xf32, #tpu.memory_space<vmem>>, vector<1x1x128x128xf32>,
      } else {
      }
      %true = arith.constant true
      %24 = arith.xori %21, %true : i1
      %25 = arith.extui %24 : i1 to i32
      %c0_i32_21 = arith.constant 0 : i32
      %26 = arith.cmpi ne, %25, %c0_i32_21 : i32
      scf.if %26 {
        %c0_42 = arith.constant 0 : index
        %c0_43 = arith.constant 0 : index
        %c0_44 = arith.constant 0 : index
        %c0_45 = arith.constant 0 : index
        %54 = vector.load %arg8[%c0_42, %c0_43, %c0_44, %c0_45] : memref<4x1x128x128xf32, #tpu.memory_space<vmem>>, vector<1x1x128x128xf32>
        %55 = vector.shape_cast %54 : vector<1x1x128x128xf32> to vector<128x128xf32>
        %56 = vector.shape_cast %20 : vector<128x128xf32> to vector<1x1x128x128xf32>
        tpu.vector_store %arg8[%c0_42, %c0_43, %c0_44, %c0_45], %56 {strides = array<i32>} : memref<4x1x128x128xf32, #tpu.memory_space<vmem>>, vector<1x1x128x128xf32>,
      } else {
      }
      %c4_i32_22 = arith.constant 4 : i32
      %27 = arith.muli %arg0, %c4_i32_22 : i32
      %c1_i32_23 = arith.constant 1 : i32
      %28 = arith.addi %27, %c1_i32_23 : i32
      %c0_24 = arith.constant 0 : index
      %c128 = arith.constant 128 : index
      %29 = vector.load %arg9[%c0_24, %c128] : memref<128x512xf32, #tpu.memory_space<vmem>>, vector<128x128xf32>
      %c3_i32_25 = arith.constant 3 : i32
      %30 = arith.cmpi slt, %28, %c3_i32_25 : i32
      %31 = arith.extui %30 : i1 to i32
      %c0_i32_26 = arith.constant 0 : i32
      %32 = arith.cmpi ne, %31, %c0_i32_26 : i32
      scf.if %32 {
        %54 = vector.extract_strided_slice %29 {offsets = [0, 64], sizes = [128, 64], strides = [1, 1]} : vector<128x128xf32> to vector<128x64xf32>
        %55 = vector.extract_strided_slice %29 {offsets = [0, 0], sizes = [128, 64], strides = [1, 1]} : vector<128x128xf32> to vector<128x64xf32>
        %56 = tpu.concatenate %54, %55 in 1 : vector<128x64xf32>, vector<128x64xf32> -> vector<128x128xf32>
        %57 = arith.mulf %29, %15 : vector<128x128xf32>
        %58 = arith.mulf %56, %17 : vector<128x128xf32>
        %59 = arith.addf %57, %58 : vector<128x128xf32>
        %c1 = arith.constant 1 : index
        %c0_42 = arith.constant 0 : index
        %c0_43 = arith.constant 0 : index
        %c0_44 = arith.constant 0 : index
        %60 = vector.load %arg8[%c1, %c0_42, %c0_43, %c0_44] : memref<4x1x128x128xf32, #tpu.memory_space<vmem>>, vector<1x1x128x128xf32>
        %61 = vector.shape_cast %60 : vector<1x1x128x128xf32> to vector<128x128xf32>
        %62 = vector.shape_cast %59 : vector<128x128xf32> to vector<1x1x128x128xf32>
        tpu.vector_store %arg8[%c1, %c0_42, %c0_43, %c0_44], %62 {strides = array<i32>} : memref<4x1x128x128xf32, #tpu.memory_space<vmem>>, vector<1x1x128x128xf32>,
      } else {
      }
      %true_27 = arith.constant true
      %33 = arith.xori %30, %true_27 : i1
      %34 = arith.extui %33 : i1 to i32
      %c0_i32_28 = arith.constant 0 : i32
      %35 = arith.cmpi ne, %34, %c0_i32_28 : i32
      scf.if %35 {
        %c1 = arith.constant 1 : index
        %c0_42 = arith.constant 0 : index
        %c0_43 = arith.constant 0 : index
        %c0_44 = arith.constant 0 : index
        %54 = vector.load %arg8[%c1, %c0_42, %c0_43, %c0_44] : memref<4x1x128x128xf32, #tpu.memory_space<vmem>>, vector<1x1x128x128xf32>
        %55 = vector.shape_cast %54 : vector<1x1x128x128xf32> to vector<128x128xf32>
        %56 = vector.shape_cast %29 : vector<128x128xf32> to vector<1x1x128x128xf32>
        tpu.vector_store %arg8[%c1, %c0_42, %c0_43, %c0_44], %56 {strides = array<i32>} : memref<4x1x128x128xf32, #tpu.memory_space<vmem>>, vector<1x1x128x128xf32>,
      } else {
      }
      %c4_i32_29 = arith.constant 4 : i32
      %36 = arith.muli %arg0, %c4_i32_29 : i32
      %c2_i32 = arith.constant 2 : i32
      %37 = arith.addi %36, %c2_i32 : i32
      %c0_30 = arith.constant 0 : index
      %c256 = arith.constant 256 : index
      %38 = vector.load %arg9[%c0_30, %c256] : memref<128x512xf32, #tpu.memory_space<vmem>>, vector<128x128xf32>
      %c3_i32_31 = arith.constant 3 : i32
      %39 = arith.cmpi slt, %37, %c3_i32_31 : i32
      %40 = arith.extui %39 : i1 to i32
      %c0_i32_32 = arith.constant 0 : i32
      %41 = arith.cmpi ne, %40, %c0_i32_32 : i32
      scf.if %41 {
        %54 = vector.extract_strided_slice %38 {offsets = [0, 64], sizes = [128, 64], strides = [1, 1]} : vector<128x128xf32> to vector<128x64xf32>
        %55 = vector.extract_strided_slice %38 {offsets = [0, 0], sizes = [128, 64], strides = [1, 1]} : vector<128x128xf32> to vector<128x64xf32>
        %56 = tpu.concatenate %54, %55 in 1 : vector<128x64xf32>, vector<128x64xf32> -> vector<128x128xf32>
        %57 = arith.mulf %38, %15 : vector<128x128xf32>
        %58 = arith.mulf %56, %17 : vector<128x128xf32>
        %59 = arith.addf %57, %58 : vector<128x128xf32>
        %c2 = arith.constant 2 : index
        %c0_42 = arith.constant 0 : index
        %c0_43 = arith.constant 0 : index
        %c0_44 = arith.constant 0 : index
        %60 = vector.load %arg8[%c2, %c0_42, %c0_43, %c0_44] : memref<4x1x128x128xf32, #tpu.memory_space<vmem>>, vector<1x1x128x128xf32>
        %61 = vector.shape_cast %60 : vector<1x1x128x128xf32> to vector<128x128xf32>
        %62 = vector.shape_cast %59 : vector<128x128xf32> to vector<1x1x128x128xf32>
        tpu.vector_store %arg8[%c2, %c0_42, %c0_43, %c0_44], %62 {strides = array<i32>} : memref<4x1x128x128xf32, #tpu.memory_space<vmem>>, vector<1x1x128x128xf32>,
      } else {
      }
      %true_33 = arith.constant true
      %42 = arith.xori %39, %true_33 : i1
      %43 = arith.extui %42 : i1 to i32
      %c0_i32_34 = arith.constant 0 : i32
      %44 = arith.cmpi ne, %43, %c0_i32_34 : i32
      scf.if %44 {
        %c2 = arith.constant 2 : index
        %c0_42 = arith.constant 0 : index
        %c0_43 = arith.constant 0 : index
        %c0_44 = arith.constant 0 : index
        %54 = vector.load %arg8[%c2, %c0_42, %c0_43, %c0_44] : memref<4x1x128x128xf32, #tpu.memory_space<vmem>>, vector<1x1x128x128xf32>
        %55 = vector.shape_cast %54 : vector<1x1x128x128xf32> to vector<128x128xf32>
        %56 = vector.shape_cast %38 : vector<128x128xf32> to vector<1x1x128x128xf32>
        tpu.vector_store %arg8[%c2, %c0_42, %c0_43, %c0_44], %56 {strides = array<i32>} : memref<4x1x128x128xf32, #tpu.memory_space<vmem>>, vector<1x1x128x128xf32>,
      } else {
      }
      %c4_i32_35 = arith.constant 4 : i32
      %45 = arith.muli %arg0, %c4_i32_35 : i32
      %c3_i32_36 = arith.constant 3 : i32
      %46 = arith.addi %45, %c3_i32_36 : i32
      %c0_37 = arith.constant 0 : index
      %c384 = arith.constant 384 : index
      %47 = vector.load %arg9[%c0_37, %c384] : memref<128x512xf32, #tpu.memory_space<vmem>>, vector<128x128xf32>
      %c3_i32_38 = arith.constant 3 : i32
      %48 = arith.cmpi slt, %46, %c3_i32_38 : i32
      %49 = arith.extui %48 : i1 to i32
      %c0_i32_39 = arith.constant 0 : i32
      %50 = arith.cmpi ne, %49, %c0_i32_39 : i32
      scf.if %50 {
        %54 = vector.extract_strided_slice %47 {offsets = [0, 64], sizes = [128, 64], strides = [1, 1]} : vector<128x128xf32> to vector<128x64xf32>
        %55 = vector.extract_strided_slice %47 {offsets = [0, 0], sizes = [128, 64], strides = [1, 1]} : vector<128x128xf32> to vector<128x64xf32>
        %56 = tpu.concatenate %54, %55 in 1 : vector<128x64xf32>, vector<128x64xf32> -> vector<128x128xf32>
        %57 = arith.mulf %47, %15 : vector<128x128xf32>
        %58 = arith.mulf %56, %17 : vector<128x128xf32>
        %59 = arith.addf %57, %58 : vector<128x128xf32>
        %c3 = arith.constant 3 : index
        %c0_42 = arith.constant 0 : index
        %c0_43 = arith.constant 0 : index
        %c0_44 = arith.constant 0 : index
        %60 = vector.load %arg8[%c3, %c0_42, %c0_43, %c0_44] : memref<4x1x128x128xf32, #tpu.memory_space<vmem>>, vector<1x1x128x128xf32>
        %61 = vector.shape_cast %60 : vector<1x1x128x128xf32> to vector<128x128xf32>
        %62 = vector.shape_cast %59 : vector<128x128xf32> to vector<1x1x128x128xf32>
        tpu.vector_store %arg8[%c3, %c0_42, %c0_43, %c0_44], %62 {strides = array<i32>} : memref<4x1x128x128xf32, #tpu.memory_space<vmem>>, vector<1x1x128x128xf32>,
      } else {
      }
      %true_40 = arith.constant true
      %51 = arith.xori %48, %true_40 : i1
      %52 = arith.extui %51 : i1 to i32
      %c0_i32_41 = arith.constant 0 : i32
      %53 = arith.cmpi ne, %52, %c0_i32_41 : i32
      scf.if %53 {
        %c3 = arith.constant 3 : index
        %c0_42 = arith.constant 0 : index
        %c0_43 = arith.constant 0 : index
        %c0_44 = arith.constant 0 : index
        %54 = vector.load %arg8[%c3, %c0_42, %c0_43, %c0_44] : memref<4x1x128x128xf32, #tpu.memory_space<vmem>>, vector<1x1x128x128xf32>
        %55 = vector.shape_cast %54 : vector<1x1x128x128xf32> to vector<128x128xf32>
        %56 = vector.shape_cast %47 : vector<128x128xf32> to vector<1x1x128x128xf32>
        tpu.vector_store %arg8[%c3, %c0_42, %c0_43, %c0_44], %56 {strides = array<i32>} : memref<4x1x128x128xf32, #tpu.memory_space<vmem>>, vector<1x1x128x128xf32>,
      } else {
      }
    } else {
    }
    return
  }
  func.func @transform_0(%arg0: i32, %arg1: i32, %arg2: i32, %arg3: i32) -> (i32, i32, i32) {
    %c0_i32 = arith.constant 0 : i32
    return %arg1, %arg2, %arg3 : i32, i32, i32
  }
  func.func @transform_1(%arg0: i32, %arg1: i32, %arg2: i32, %arg3: i32) -> (i32, i32, i32) {
    %c0_i32 = arith.constant 0 : i32
    %c0_i32_0 = arith.constant 0 : i32
    return %arg0, %arg3, %c0_i32 : i32, i32, i32
  }
  func.func @transform_2(%arg0: i32, %arg1: i32, %arg2: i32, %arg3: i32) -> (i32, i32, i32) {
    %c0_i32 = arith.constant 0 : i32
    %c0_i32_0 = arith.constant 0 : i32
    return %arg1, %arg2, %c0_i32 : i32, i32, i32
  }
  func.func @transform_3(%arg0: i32, %arg1: i32, %arg2: i32, %arg3: i32) -> (i32, i32, i32) {
    %c0_i32 = arith.constant 0 : i32
    %c0_i32_0 = arith.constant 0 : i32
    return %arg1, %arg2, %c0_i32 : i32, i32, i32
  }
  func.func @transform_4(%arg0: i32, %arg1: i32, %arg2: i32, %arg3: i32) -> (i32, i32, i32, i32) {
    %c0_i32 = arith.constant 0 : i32
    %c0_i32_0 = arith.constant 0 : i32
    return %arg0, %arg1, %arg2, %c0_i32 : i32, i32, i32, i32
  }
}

</mosaic_0001>

<bundles_post_ra>
// kernel: tpu_custom_call.1
= control target key start
LH: loop header
LB: loop body
LE: loop exit
PB: predicated region body
PF: predicated region fallthrough
CT: control target
= control target key end

     0   :  { %s3672_s0 = inlined_call_operand.hbm [shape: f32[2,256,256], index: 0, kind: input, shape index: {}]   ;;  %s3673_s1 = inlined_call_operand.hbm [shape: f32[1,256,512], index: 1, kind: input, shape index: {}]   ;;  %s3674_s2 = inlined_call_operand.hbm [shape: f32[2,256,128], index: 2, kind: input, shape index: {}]   ;;  %s3675_s3 = inlined_call_operand.hbm [shape: f32[2,256,128], index: 3, kind: input, shape index: {}]   ;;  %s3676_s4 = inlined_call_operand.hbm [shape: f32[4,2,256,128], index: 4, kind: output, shape index: {}]  }
   0x1   :  { %3701 = sst [smem:[#allocation49_spill]] %s3672_s0 }
   0x2   :  { %3702 = sst [smem:[#allocation50_spill]] %s3673_s1 }
   0x3   :  { %3703 = sst [smem:[#allocation51_spill]] %s3676_s4 }
   0x4   :  { %9 = vsyncpa [#allocation4], 0 }
   0x5   :  { %11 = vsyncpa [#allocation4 + $0x1], 0 }
   0x6   :  { %12 = vsyncpa [#allocation7], 0 }
   0x7   :  { %14 = vsyncpa [#allocation7 + $0x1], 0 }
   0x8   :  { %15 = vsyncpa [#allocation10], 0 }
   0x9   :  { %17 = vsyncpa [#allocation10 + $0x1], 0 }
   0xa   :  { %18 = vsyncpa [#allocation5], 0 }
   0xb   :  { %20 = vsyncpa [#allocation5 + $0x1], 0  ;;  %s2605_s15 = smov 0   ;;  %s2607_s16 = smov 0  }
   0xc   :  { %s2609_s17 = smov 0   ;;  %s2611_s18 = smov 0  }
   0xd   :  { %s2613_s19 = smov 0   ;;  %s2615_s20 = smov 0  }
   0xe   :  { %s2617_s21 = smov 0   ;;  %s2619_s22 = smov 0  }
   0xf   :  { %s2621_s23 = smov 0   ;;  %s2623_s24 = smov 0  }
  0x10   :  { %s2625_s25 = smov 0   ;;  %s2627_s26 = smov 0  }
  0x11   :  { %s2629_s27 = smov 0   ;;  %s2631_s28 = smov 0  }
  0x12   :  { %s2633_s29 = smov 0   ;;  %s2635_s30 = smov 0  }
  0x13 LB: > { %3704 = sst [smem:[#allocation19_spill]] %s2515_s19  ;;  %s2686_s5 = sadd.s32 4294967295, %s2559_s30   ;;  %s2559_s30 = sphi %s2635_s30, %s26_s30   ;;  %s2555_s29 = sphi %s2633_s29, %s3801_s29   ;;  %s2551_s28 = sphi %s2631_s28, %s3789_s28   ;;  %s2547_s27 = sphi %s2629_s27, %s3788_s27   ;;  %s2543_s26 = sphi %s2627_s26, %s3800_s26   ;;  %s2539_s25 = sphi %s2625_s25, %s3799_s25   ;;  %s2535_s24 = sphi %s2623_s24, %s3786_s24   ;;  %s2531_s23 = sphi %s2621_s23, %s3785_s23   ;;  %s2527_s22 = sphi %s2619_s22, %s3798_s22   ;;  %s2523_s21 = sphi %s2617_s21, %s3797_s21   ;;  %s2519_s20 = sphi %s2615_s20, %s3796_s20   ;;  %s2515_s19 = sphi %s2613_s19, %s3795_s19   ;;  %s2511_s18 = sphi %s2611_s18, %s3781_s18   ;;  %s2507_s17 = sphi %s2609_s17, %s3794_s17   ;;  %s2503_s16 = sphi %s2607_s16, %s3793_s16   ;;  %s2499_s15 = sphi %s2605_s15, %s3791_s15  }
  0x14   : > { %3705 = sst [smem:[#allocation20_spill]] %s2519_s20  ;;  %s41_s6 = sadd.s32 1, %s2547_s27 }
  0x15   : > { %3706 = sst [smem:[#allocation21_spill]] %s2531_s23  ;;  %p42_p0 = scmp.ge.s32.totalorder %s41_s6, 2 }
  0x16   : > { %3707 = sst [smem:[#allocation22_spill]] %s2535_s24  ;;  %s44_s7 = sadd.s32 1, %s2551_s28 }
  0x17   : > { %3708 = sst [smem:[#allocation23_spill]] %s2539_s25  ;;  %s48_s8 = sadd.s32 1, %s2555_s29 }
  0x18   : > { %3709 = sst [smem:[#allocation24_spill]] %s2543_s26  ;;  %p3687_p1 = scmp.eq.s32.totalorder %s2559_s30, 0 }
  0x19   : > { %3710 = sst [smem:[#allocation25_spill]] %s2547_s27  ;;  %s3803_s6 = smov (%p42_p0, %s41_s6), 0 }
  0x1a   : > { %3711 = sst [smem:[#allocation26_spill]] %s2551_s28  ;;  %s3805_s7 = smov (!%p42_p0, %s44_s7), %s2551_s28 }
  0x1b   : > { %3712 = sst [smem:[#allocation27_spill]] %s3803_s6  ;;  %s59_s9 = ssub.s32 %s2547_s27, %s3803_s6 }
  0x1c   : > { %p3686_p2 = scmp.eq.s32.totalorder %s2686_s5, 0  ;;  %p46_p3 = scmp.ge.s32.totalorder %s3805_s7, 2 }
  0x1d   : > { %p89_p4 = scmp.eq.s32.totalorder %s59_s9, 0  ;;  %s91_s10 = sadd.s32 1, %s2519_s20 }
  0x1e   : > { %p98_p5 = scmp.ne.s32.totalorder %s2519_s20, %s2515_s19  ;;  %s3807_s7 = smov (%p46_p3, %s3805_s7), 0 }
  0x1f   : > { %3713 = sst [smem:[#allocation28_spill]] %s3807_s7  ;;  %s3809_s8 = smov (!%p46_p3, %s48_s8), %s2555_s29 }
  0x20   : > { %s57_s11 = ssub.s32 %s2551_s28, %s3807_s7  ;;  %p2708_p6 = por %p98_p5, %p3687_p1 }
  0x21   : > { %p50_p7 = scmp.ge.s32.totalorder %s3809_s8, 2  ;;  %p104_p8 = scmp.ne.s32.totalorder %s2515_s19, %s2511_s18 }
  0x22   : > { %s2715_s13 = scalar_select %p89_p4, %s2519_s20, %s91_s10  }
  0x23   : > { %s3811_s8 = smov (%p50_p7, %s3809_s8), 0  ;;  %p2721_p9 = por %p104_p8, %p3686_p2 }
  0x24   : > { %3715 = sst [smem:[#allocation29_spill]] %s2715_s13  ;;  %s56_s7 = ssub.s32 %s2555_s29, %s3811_s8 }
  0x25   : > { %3716 = sst [smem:[#allocation30_spill]] %s3811_s8  ;;  %p3682_p10 = scmp.lt.s32.totalorder %s2559_s30, 8 }
  0x26   : > { %s3717_s14 = scalar_select %p2721_p9, 1, 0 }
  0x27   : > { %s2728_s6 = sor.u32 %s57_s11, %s56_s7  ;;  %s239_s4 = sand.u32 1, %s2559_s30  }
  0x28   : > { %3718 = sst [smem:[#allocation31_spill]] %s3717_s14  ;;  %s60_s26 = sor.u32 %s59_s9, %s2728_s6 }
  0x29   : > { %p2733_p12 = scmp.eq.s32.totalorder %s60_s26, 0  ;;  %s241_s10 = sand.u32 1, %s2519_s20  }
  0x2a   : > { %s2122_s13 = sshll.u32 %s2547_s27, 13  ;;  %s1998_s25 = sshll.u32 %s241_s10, 9 }
  0x2b   : > { %s3720_s1 = sld [smem:[#allocation50_spill]]  ;;  %p2746_p13 = pnand %p3682_p10, %p2708_p6 }
  0x2c   : > { %s243_s9 = scalar_lea.vmem [#allocation6], %s1998_s25  ;;  %p2010_p0 = scmp.ge.s32.totalorder %s2559_s30, 1 }
  0x2d   : > { %s253_s11 = sshll.u32 %s243_s9, 4  ;;  %s2751_s26 = scalar_lea.sflag [#allocation7], %s239_s4  ;;  %s254_s11 = int_to_ptr.vmem [resolvable:$true] %s253_s11 }
  0x2e   : > { %p2303_p3 = pneg %p2746_p13  ;;  %s2314_s10 = scalar_lea.vmem %s254_s11, 8192 }
  0x2f   : > { %p2315_p4 = scmp.ne.s32.totalorder %s254_s11, %s2314_s10  ;;  %s2561_s19 = smov [#allocation6]  }
  0x30   : > { %s2319_s24 = sshll.u32 %s2561_s19, 4  ;;  %s2320_s24 = int_to_ptr.vmem [resolvable:$false] %s2319_s24 }
  0x31   : > { %s252_s14 = scalar_lea.hbm %s3720_s1, %s2122_s13  ;;  %p2317_p5 = pnand %p2315_p4, %p2303_p3 }
  0x32   : > { %s2321_s12 = scalar_lea.vmem %s2320_s24, 16384  ;;  %p2322_p6 = scmp.lt.s32.totalorder %s254_s11, %s2320_s24 }
  0x33   : > { %p2318_p7 = pneg %p2317_p5  ;;  %p2323_p8 = scmp.lt.s32.totalorder %s2321_s12, %s2314_s10 }
  0x35   : > { %p2324_p11 = por %p2323_p8, %p2322_p6 }
  0x37   : > { %p2325_p10 = pnand %p2324_p11, %p2318_p7 }
  0x39   : > { %2328 = shalt.err (!%p2325_p10)
}
  0x3a   : > { %s2562_s25 = smov 512   ;;  %s2563_s4 = smov 32  }
  0x3b   : > { %2145 = dma.hbm_to_vmem [thread:$0]  (!%p2746_p13), %s252_s14, 8192, %s254_s11, %s2751_s26, %s2562_s25, %s2562_s25, %s2563_s4  }
  0x3c   : > { %p307_p10 = scmp.lt.s32.totalorder %s2559_s30, 9  ;;  %s63_s9 = sadd.s32 1, %s2531_s23 }
  0x3d   : > { %p70_p3 = scmp.ne.s32.totalorder %s2531_s23, %s2527_s22  ;;  %p76_p5 = scmp.ne.s32.totalorder %s2527_s22, %s2523_s21 }
  0x3e   : > { %p2761_p11 = pnand %p2010_p0, %p307_p10  ;;  %s214_s14 = sand.u32 1, %s2531_s23  }
  0x3f   : > { %s2771_s10 = scalar_select %p2733_p12, %s2531_s23, %s63_s9  }
  0x40   : > { %p2775_p4 = por %p3687_p1, %p70_p3  ;;  %s2120_s7 = sshll.u32 %s2551_s28, 5 }
  0x41   : > { %3723 = sst [smem:[#allocation32_spill]] %s2771_s10  ;;  %p2785_p13 = por %p3686_p2, %p76_p5 }
  0x42   : > { %s1993_s24 = sshll.u32 %s214_s14, 7  ;;  %s224_s12 = sadd.s32 %s2547_s27, %s2120_s7 }
  0x43   : > { %s1996_s18 = sshll.u32 %s2555_s29, 6  ;;  %s218_s4 = scalar_lea.vmem [#allocation3], %s1993_s24 }
  0x44   : > { %s226_s25 = sadd.s32 %s1996_s18, %s224_s12  ;;  %s229_s9 = sshll.u32 %s218_s4, 4  ;;  %s230_s9 = int_to_ptr.vmem [resolvable:$true] %s229_s9 }
  0x45   : > { %s1997_s1 = sshll.u32 %s226_s25, 7  ;;  %s3726_s0 = sld [smem:[#allocation49_spill]] }
  0x46   : > { %p3727_p12 = scmp.lt.s32.totalorder %s2559_s30, 8  ;;  %s215_s23 = scalar_lea.sflag [#allocation4], %s214_s14 }
  0x47   : > { %s2342_s7 = scalar_lea.vmem %s230_s9, 2048  ;;  %s2564_s24 = smov [#allocation3]  }
  0x48   : > { %p2798_p0 = pnand %p3727_p12, %p2775_p4  ;;  %p2343_p6 = scmp.ne.s32.totalorder %s230_s9, %s2342_s7 }
  0x49   : > { %s2347_s12 = sshll.u32 %s2564_s24, 4  ;;  %s2348_s12 = int_to_ptr.vmem [resolvable:$false] %s2347_s12 }
  0x4a   : > { %p2331_p7 = pneg %p2798_p0  ;;  %s2349_s18 = scalar_lea.vmem %s2348_s12, 4096 }
  0x4b   : > { %s228_s20 = scalar_lea.hbm %s3726_s0, %s1997_s1  ;;  %p2350_p3 = scmp.lt.s32.totalorder %s230_s9, %s2348_s12 }
  0x4c   : > { %p2345_p8 = pnand %p2343_p6, %p2331_p7  ;;  %p2351_p5 = scmp.lt.s32.totalorder %s2349_s18, %s2342_s7 }
  0x4e   : > { %p2346_p10 = pneg %p2345_p8  ;;  %p2352_p2 = por %p2351_p5, %p2350_p3 }
  0x50   : > { %p2353_p1 = pnand %p2352_p2, %p2346_p10 }
  0x52   : > { %2356 = shalt.err (!%p2353_p1)
}
  0x53   : > { %s2565_s1 = smov 256   ;;  %s3688_s8 = smov 128  }
  0x54   : > { %s3690_s10 = smov 8   ;;  %s1990_s19 = sadd.s32 4294967294, %s2559_s30  }
  0x55   : > { %2142 = dma.hbm_to_vmem [thread:$0]  (!%p2798_p0), %s228_s20, 2048, %s230_s9, %s215_s23, %s2565_s1, %s3688_s8, %s3690_s10  }
  0x56   : > { %s119_s14 = sadd.s32 1, %s2507_s17  ;;  %p3729_p1 = scmp.eq.s32.totalorder %s2728_s6, 0 }
  0x57   : > { %p126_p2 = scmp.ne.s32.totalorder %s2507_s17, %s2503_s16  ;;  %p132_p4 = scmp.ne.s32.totalorder %s2503_s16, %s2499_s15 }
  0x58   : > { %s2813_s25 = scalar_select %p3729_p1, %s2507_s17, %s119_s14  }
  0x59   : > { %p188_p12 = scmp.eq.s32.totalorder %s2686_s5, 7  ;;  %p194_p7 = scmp.eq.s32.totalorder %s1990_s19, 7 }
  0x5a   : > { %p3730_p6 = scmp.eq.s32.totalorder %s2559_s30, 0  ;;  %p3732_p10 = scmp.eq.s32.totalorder %s2686_s5, 0 }
  0x5b   : > { %p2832_p0 = por %p188_p12, %p126_p2  ;;  %p2836_p5 = por %p194_p7, %p132_p4 }
  0x5c   : > { %p2822_p8 = por %p126_p2, %p3730_p6  ;;  %p2828_p3 = por %p132_p4, %p3732_p10 }
  0x5d   : > { %s3735_s23 = scalar_select %p2836_p5, 1, 0 }
  0x5e   : > { %s265_s6 = sand.u32 1, %s2507_s17   ;;  %s2003_s9 = sshll.u32 %s2551_s28, 4 }
  0x5f   : > { %s2002_s7 = sshll.u32 %s265_s6, 7  ;;  %s2004_s24 = sshll.u32 %s2555_s29, 5 }
  0x60   : > { %s273_s12 = sadd.s32 %s2004_s24, %s2003_s9  ;;  %s267_s1 = scalar_lea.vmem [#allocation8], %s2002_s7 }
  0x61   : > { %s2005_s18 = sshll.u32 %s273_s12, 7  ;;  %s276_s19 = sshll.u32 %s267_s1, 4  ;;  %s277_s19 = int_to_ptr.vmem [resolvable:$true] %s276_s19 }
  0x62   : > { %s275_s10 = scalar_lea.hbm %s3674_s2, %s2005_s18  ;;  %p3736_p1 = scmp.lt.s32.totalorder %s2559_s30, 8 }
  0x63   : > { %s2859_s9 = scalar_lea.hbm %s3675_s3, %s2005_s18  ;;  %s290_s24 = scalar_lea.vmem [#allocation9], %s2002_s7 }
  0x64   : > { %p2852_p2 = pnand %p3736_p1, %p2822_p8  ;;  %s299_s12 = sshll.u32 %s290_s24, 4  ;;  %s300_s12 = int_to_ptr.vmem [resolvable:$true] %s299_s12 }
  0x65   : > { %s2370_s8 = scalar_lea.vmem %s277_s19, 2048  ;;  %s2568_s4 = smov [#allocation8]  }
  0x66   : > { %p2359_p4 = pneg %p2852_p2  ;;  %p2371_p12 = scmp.ne.s32.totalorder %s277_s19, %s2370_s8 }
  0x67   : > { %s2375_s1 = sshll.u32 %s2568_s4, 4  ;;  %s2376_s1 = int_to_ptr.vmem [resolvable:$false] %s2375_s1 }
  0x68   : > { %p2373_p7 = pnand %p2371_p12, %p2359_p4  ;;  %s2377_s14 = scalar_lea.vmem %s2376_s1, 4096 }
  0x69   : > { %p2378_p8 = scmp.lt.s32.totalorder %s277_s19, %s2376_s1  ;;  %p2379_p10 = scmp.lt.s32.totalorder %s2377_s14, %s2370_s8 }
  0x6a   : > { %p2374_p6 = pneg %p2373_p7 }
  0x6b   : > { %p2380_p1 = por %p2379_p10, %p2378_p8 }
  0x6d   : > { %p2381_p5 = pnand %p2380_p1, %p2374_p6 }
  0x6f   : > { %2384 = shalt.err (!%p2381_p5)
}
  0x70   : > { %s3738_s27 = smov 8   ;;  %s3739_s28 = smov 128  }
  0x71   : > { %2148 = dma.hbm_to_vmem [thread:$0]  (!%p2852_p2), %s275_s10, 2048, %s277_s19, %s2751_s26, %s3739_s28, %s3739_s28, %s3738_s27  }
  0x72   : > { %s287_s7 = scalar_lea.sflag [#allocation10], %s265_s6  ;;  %s2398_s18 = scalar_lea.vmem %s300_s12, 2048 }
  0x73   : > { %p2399_p12 = scmp.ne.s32.totalorder %s300_s12, %s2398_s18  ;;  %s2569_s24 = smov [#allocation9]  }
  0x74   : > { %s2403_s8 = sshll.u32 %s2569_s24, 4  ;;  %s2404_s8 = int_to_ptr.vmem [resolvable:$false] %s2403_s8 }
  0x75   : > { %p2401_p7 = pnand %p2399_p12, %p2359_p4  ;;  %s2405_s4 = scalar_lea.vmem %s2404_s8, 4096 }
  0x76   : > { %p2406_p5 = scmp.lt.s32.totalorder %s300_s12, %s2404_s8  ;;  %p2407_p6 = scmp.lt.s32.totalorder %s2405_s4, %s2398_s18 }
  0x77   : > { %p2402_p8 = pneg %p2401_p7 }
  0x78   : > { %p2408_p10 = por %p2407_p6, %p2406_p5 }
  0x7a   : > { %p2409_p1 = pnand %p2408_p10, %p2402_p8 }
  0x7c   : > { %2412 = shalt.err (!%p2409_p1)
}
  0x7d   : > { %2151 = dma.hbm_to_vmem [thread:$0]  (!%p2852_p2), %s2859_s9, 2048, %s300_s12, %s287_s7, %s3739_s28, %s3739_s28, %s3738_s27  }
  0x7e   : > { %311 = sbr.rel (%p2761_p11) target bundleno = 712 (0x2c8), region = 36  ;;  %s313_s26 = sand.u32 (!%p2761_p11), 1, %s2527_s22  }
  0x7f   : > { %s2011_s10 = sshll.u32 (!%p2761_p11), %s313_s26, 7  ;;  %s314_s6 = scalar_lea.sflag (!%p2761_p11), [#allocation4], %s313_s26 }
  0x80   : > { %s2886_s19 = scalar_lea.vmem (!%p2761_p11), [#allocation3], %s2011_s10 }
  0x83   : > { %2478 = dma.done.wait (%p2785_p13), %s314_s6, 2048  }
  0x84   : > { %2480 = vsyncadd (%p2785_p13), %s314_s6, 4294965248  ;;  %s3740_s0 = sld [smem:[#allocation19_spill]]  ;;  %s322_s14 = sand.u32 1, %s2686_s5  }
  0x85   : > { %s323_s13 = scalar_lea.sflag [#allocation7], %s322_s14 }
  0x8a   : > { %s324_s9 = sand.u32 1, %s3740_s0  }
  0x8b   : > { %s2012_s12 = sshll.u32 %s324_s9, 9 }
  0x8c   : > { %s2894_s27 = scalar_lea.vmem [#allocation6], %s2012_s12 }
  0x8d   : > { %2482 = dma.done.wait (%p2721_p9), %s323_s13, 8192  }
  0x8e   : > { %2484 = vsyncadd (%p2721_p9), %s323_s13, 4294959104  ;;  %s2901_s28 = sand.u32 1, %s2503_s16  }
  0x8f   : > { %s2013_s11 = sshll.u32 %s2901_s28, 7 }
  0x90   : > { %s2904_s7 = scalar_lea.vmem [#allocation8], %s2013_s11 }
  0x91   : > { %2486 = dma.done.wait (%p2828_p3), %s323_s13, 2048  }
  0x92   : > { %2488 = vsyncadd (%p2828_p3), %s323_s13, 4294965248  ;;  %s341_s5 = scalar_lea.sflag [#allocation10], %s2901_s28  ;;  %s2911_s18 = scalar_lea.vmem [#allocation9], %s2013_s11 }
  0x93   : > { %2490 = dma.done.wait (%p2828_p3), %s341_s5, 2048  }
  0x94   : > { %2492 = vsyncadd (%p2828_p3), %s341_s5, 4294965248  ;;  %s2015_s24 = sshll.u32 %s2901_s28, 9  ;;  %s3742_s4 = sld [smem:[#allocation22_spill]] }
  0x95   : > { %s2918_s8 = scalar_lea.vmem [#allocation11], %s2015_s24 }
  0x9a   : > { %p2016_p9 = scmp.ne.s32.totalorder %s3742_s4, 0 }
  0x9c   : > { %393 = sbr.rel (%p2016_p9) target bundleno = 194 (0xc2), region = 56 }
  0xa1   : > { %v2570_v0 = vmov 0.0  }
  0xa2   : > { %394 = vst [vmem:[#allocation2 + $0xb0] sm:$0xff] %v2570_v0  ;;  %395 = vst [vmem:[#allocation2 + $0x1b0] sm:$0xff] %v2570_v0 }
  0xa3   : > { %396 = vst [vmem:[#allocation2 + $0xd8] sm:$0xff] %v2570_v0  ;;  %397 = vst [vmem:[#allocation2 + $0x18] sm:$0xff] %v2570_v0 }
  0xa4   : > { %398 = vst [vmem:[#allocation2 + $0x50] sm:$0xff] %v2570_v0  ;;  %399 = vst [vmem:[#allocation2 + $0x168] sm:$0xff] %v2570_v0 }
  0xa5   : > { %400 = vst [vmem:[#allocation2 + $0x130] sm:$0xff] %v2570_v0  ;;  %401 = vst [vmem:[#allocation2 + $0x48] sm:$0xff] %v2570_v0 }
  0xa6   : > { %402 = vst [vmem:[#allocation2 + $0x180] sm:$0xff] %v2570_v0  ;;  %403 = vst [vmem:[#allocation2 + $0x110] sm:$0xff] %v2570_v0 }
  0xa7   : > { %404 = vst [vmem:[#allocation2 + $0x118] sm:$0xff] %v2570_v0  ;;  %405 = vst [vmem:[#allocation2 + $0x98] sm:$0xff] %v2570_v0 }
  0xa8   : > { %406 = vst [vmem:[#allocation2 + $0x120] sm:$0xff] %v2570_v0  ;;  %407 = vst [vmem:[#allocation2 + $0x150] sm:$0xff] %v2570_v0 }
  0xa9   : > { %408 = vst [vmem:[#allocation2 + $0x108] sm:$0xff] %v2570_v0  ;;  %409 = vst [vmem:[#allocation2 + $0x60] sm:$0xff] %v2570_v0 }
  0xaa   : > { %410 = vst [vmem:[#allocation2 + $0xe0] sm:$0xff] %v2570_v0  ;;  %411 = vst [vmem:[#allocation2 + $0x188] sm:$0xff] %v2570_v0 }
  0xab   : > { %412 = vst [vmem:[#allocation2 + $0x138] sm:$0xff] %v2570_v0  ;;  %413 = vst [vmem:[#allocation2 + $0x140] sm:$0xff] %v2570_v0 }
  0xac   : > { %414 = vst [vmem:[#allocation2 + $0x80] sm:$0xff] %v2570_v0  ;;  %415 = vst [vmem:[#allocation2 + $0x1a8] sm:$0xff] %v2570_v0 }
  0xad   : > { %416 = vst [vmem:[#allocation2 + $0x1b8] sm:$0xff] %v2570_v0  ;;  %417 = vst [vmem:[#allocation2 + $0x28] sm:$0xff] %v2570_v0 }
  0xae   : > { %418 = vst [vmem:[#allocation2 + $0x1e8] sm:$0xff] %v2570_v0  ;;  %419 = vst [vmem:[#allocation2 + $0xf8] sm:$0xff] %v2570_v0 }
  0xaf   : > { %420 = vst [vmem:[#allocation2 + $0x160] sm:$0xff] %v2570_v0  ;;  %421 = vst [vmem:[#allocation2 + $0x30] sm:$0xff] %v2570_v0 }
  0xb0   : > { %422 = vst [vmem:[#allocation2 + $0x1e0] sm:$0xff] %v2570_v0  ;;  %423 = vst [vmem:[#allocation2] sm:$0xff] %v2570_v0 }
  0xb1   : > { %424 = vst [vmem:[#allocation2 + $0xf0] sm:$0xff] %v2570_v0  ;;  %425 = vst [vmem:[#allocation2 + $0x8] sm:$0xff] %v2570_v0 }
  0xb2   : > { %426 = vst [vmem:[#allocation2 + $0x148] sm:$0xff] %v2570_v0  ;;  %427 = vst [vmem:[#allocation2 + $0x1d0] sm:$0xff] %v2570_v0 }
  0xb3   : > { %428 = vst [vmem:[#allocation2 + $0x100] sm:$0xff] %v2570_v0  ;;  %429 = vst [vmem:[#allocation2 + $0xc8] sm:$0xff] %v2570_v0 }
  0xb4   : > { %430 = vst [vmem:[#allocation2 + $0x40] sm:$0xff] %v2570_v0  ;;  %431 = vst [vmem:[#allocation2 + $0x1f8] sm:$0xff] %v2570_v0 }
  0xb5   : > { %432 = vst [vmem:[#allocation2 + $0x20] sm:$0xff] %v2570_v0  ;;  %433 = vst [vmem:[#allocation2 + $0x128] sm:$0xff] %v2570_v0 }
  0xb6   : > { %434 = vst [vmem:[#allocation2 + $0x1a0] sm:$0xff] %v2570_v0  ;;  %435 = vst [vmem:[#allocation2 + $0x1f0] sm:$0xff] %v2570_v0 }
  0xb7   : > { %436 = vst [vmem:[#allocation2 + $0xe8] sm:$0xff] %v2570_v0  ;;  %437 = vst [vmem:[#allocation2 + $0x78] sm:$0xff] %v2570_v0 }
  0xb8   : > { %438 = vst [vmem:[#allocation2 + $0x70] sm:$0xff] %v2570_v0  ;;  %439 = vst [vmem:[#allocation2 + $0x90] sm:$0xff] %v2570_v0 }
  0xb9   : > { %440 = vst [vmem:[#allocation2 + $0x1d8] sm:$0xff] %v2570_v0  ;;  %441 = vst [vmem:[#allocation2 + $0xd0] sm:$0xff] %v2570_v0 }
  0xba   : > { %442 = vst [vmem:[#allocation2 + $0xb8] sm:$0xff] %v2570_v0  ;;  %443 = vst [vmem:[#allocation2 + $0x88] sm:$0xff] %v2570_v0 }
  0xbb   : > { %444 = vst [vmem:[#allocation2 + $0xa8] sm:$0xff] %v2570_v0  ;;  %445 = vst [vmem:[#allocation2 + $0x1c8] sm:$0xff] %v2570_v0 }
  0xbc   : > { %446 = vst [vmem:[#allocation2 + $0x170] sm:$0xff] %v2570_v0  ;;  %447 = vst [vmem:[#allocation2 + $0x178] sm:$0xff] %v2570_v0 }
  0xbd   : > { %448 = vst [vmem:[#allocation2 + $0x68] sm:$0xff] %v2570_v0  ;;  %449 = vst [vmem:[#allocation2 + $0x190] sm:$0xff] %v2570_v0 }
  0xbe   : > { %450 = vst [vmem:[#allocation2 + $0x198] sm:$0xff] %v2570_v0  ;;  %451 = vst [vmem:[#allocation2 + $0x38] sm:$0xff] %v2570_v0 }
  0xbf   : > { %452 = vst [vmem:[#allocation2 + $0xc0] sm:$0xff] %v2570_v0  ;;  %453 = vst [vmem:[#allocation2 + $0x1c0] sm:$0xff] %v2570_v0 }
  0xc0   : > { %454 = vst [vmem:[#allocation2 + $0x158] sm:$0xff] %v2570_v0  ;;  %455 = vst [vmem:[#allocation2 + $0x10] sm:$0xff] %v2570_v0 }
  0xc1   : > { %456 = vst [vmem:[#allocation2 + $0x58] sm:$0xff] %v2570_v0  ;;  %457 = vst [vmem:[#allocation2 + $0xa0] sm:$0xff] %v2570_v0 }
  0xc2 PF: > { %v599_v1 = vld [vmem:[%s2894_s27 + $0x1e8] sm:$0xff]  ;;  %v601_v2 = vld [vmem:[%s2894_s27 + $0x1f8] sm:$0xff]  ;;  %v598_v3 = vld [vmem:[%s2894_s27 + $0x1e0] sm:$0xff]  ;;  %s3743_s21 = sld [smem:[#allocation22_spill]] }
  0xc3   : > { %602 = vmatprep.subr.mxu0 %v599_v1  ;;  %763 = vmatprep.subr.mxu1 %v601_v2  ;;  %v600_v4 = vld [vmem:[%s2894_s27 + $0x1f0] sm:$0xff]  ;;  %v595_v5 = vld [vmem:[%s2894_s27 + $0x1c8] sm:$0xff]  ;;  %v597_v6 = vld [vmem:[%s2894_s27 + $0x1d8] sm:$0xff]  ;;  %v2571_v2 = vmov 0.0  }
  0xc4   : > { %603 = vmatpush1.msra.mxu0 %v598_v3  ;;  %764 = vmatpush1.msra.mxu1 %v600_v4  ;;  %v594_v7 = vld [vmem:[%s2894_s27 + $0x1c0] sm:$0xff]  ;;  %v596_v8 = vld [vmem:[%s2894_s27 + $0x1d0] sm:$0xff]  ;;  %v591_v9 = vld [vmem:[%s2894_s27 + $0x1a8] sm:$0xff] }
  0xc5   : > { %604 = vmatprep.subr.mxu0 %v595_v5  ;;  %765 = vmatprep.subr.mxu1 %v597_v6  ;;  %v593_v10 = vld [vmem:[%s2894_s27 + $0x1b8] sm:$0xff]  ;;  %v590_v11 = vld [vmem:[%s2894_s27 + $0x1a0] sm:$0xff]  ;;  %v592_v12 = vld [vmem:[%s2894_s27 + $0x1b0] sm:$0xff] }
  0xc6   : > { %605 = vmatpush1.msra.mxu0 %v594_v7  ;;  %766 = vmatpush1.msra.mxu1 %v596_v8  ;;  %v587_v13 = vld [vmem:[%s2894_s27 + $0x188] sm:$0xff]  ;;  %v589_v14 = vld [vmem:[%s2894_s27 + $0x198] sm:$0xff]  ;;  %v586_v15 = vld [vmem:[%s2894_s27 + $0x180] sm:$0xff] }
  0xc7   : > { %606 = vmatprep.subr.mxu0 %v591_v9  ;;  %767 = vmatprep.subr.mxu1 %v593_v10  ;;  %v588_v16 = vld [vmem:[%s2894_s27 + $0x190] sm:$0xff]  ;;  %v583_v17 = vld [vmem:[%s2894_s27 + $0x168] sm:$0xff]  ;;  %v585_v18 = vld [vmem:[%s2894_s27 + $0x178] sm:$0xff] }
  0xc8   : > { %607 = vmatpush1.msra.mxu0 %v590_v11  ;;  %768 = vmatpush1.msra.mxu1 %v592_v12  ;;  %v582_v19 = vld [vmem:[%s2894_s27 + $0x160] sm:$0xff]  ;;  %v584_v20 = vld [vmem:[%s2894_s27 + $0x170] sm:$0xff]  ;;  %v579_v21 = vld [vmem:[%s2894_s27 + $0x148] sm:$0xff]  ;;  %p2017_p11 = scmp.ne.s32.totalorder %s3743_s21, 1 }
  0xc9   : > { %608 = vmatprep.subr.mxu0 %v587_v13  ;;  %769 = vmatprep.subr.mxu1 %v589_v14  ;;  %v581_v22 = vld [vmem:[%s2894_s27 + $0x158] sm:$0xff]  ;;  %v578_v23 = vld [vmem:[%s2894_s27 + $0x140] sm:$0xff]  ;;  %v580_v24 = vld [vmem:[%s2894_s27 + $0x150] sm:$0xff] }
  0xca   : > { %609 = vmatpush1.msra.mxu0 %v586_v15  ;;  %770 = vmatpush1.msra.mxu1 %v588_v16  ;;  %v575_v25 = vld [vmem:[%s2894_s27 + $0x128] sm:$0xff]  ;;  %v577_v26 = vld [vmem:[%s2894_s27 + $0x138] sm:$0xff]  ;;  %v574_v27 = vld [vmem:[%s2894_s27 + $0x120] sm:$0xff] }
  0xcb   : > { %610 = vmatprep.subr.mxu0 %v583_v17  ;;  %771 = vmatprep.subr.mxu1 %v585_v18  ;;  %v576_v28 = vld [vmem:[%s2894_s27 + $0x130] sm:$0xff]  ;;  %v571_v29 = vld [vmem:[%s2894_s27 + $0x108] sm:$0xff]  ;;  %v573_v30 = vld [vmem:[%s2894_s27 + $0x118] sm:$0xff] }
  0xcc   : > { %611 = vmatpush1.msra.mxu0 %v582_v19  ;;  %772 = vmatpush1.msra.mxu1 %v584_v20  ;;  %v570_v31 = vld [vmem:[%s2894_s27 + $0x100] sm:$0xff]  ;;  %v572_v32 = vld [vmem:[%s2894_s27 + $0x110] sm:$0xff]  ;;  %v567_v33 = vld [vmem:[%s2894_s27 + $0xe8] sm:$0xff] }
  0xcd   : > { %612 = vmatprep.subr.mxu0 %v579_v21  ;;  %773 = vmatprep.subr.mxu1 %v581_v22  ;;  %v569_v34 = vld [vmem:[%s2894_s27 + $0xf8] sm:$0xff]  ;;  %v566_v35 = vld [vmem:[%s2894_s27 + $0xe0] sm:$0xff]  ;;  %v568_v36 = vld [vmem:[%s2894_s27 + $0xf0] sm:$0xff] }
  0xce   : > { %613 = vmatpush1.msra.mxu0 %v578_v23  ;;  %774 = vmatpush1.msra.mxu1 %v580_v24  ;;  %v563_v37 = vld [vmem:[%s2894_s27 + $0xc8] sm:$0xff]  ;;  %v565_v38 = vld [vmem:[%s2894_s27 + $0xd8] sm:$0xff]  ;;  %v562_v39 = vld [vmem:[%s2894_s27 + $0xc0] sm:$0xff] }
  0xcf   : > { %614 = vmatprep.subr.mxu0 %v575_v25  ;;  %775 = vmatprep.subr.mxu1 %v577_v26  ;;  %v564_v40 = vld [vmem:[%s2894_s27 + $0xd0] sm:$0xff]  ;;  %v559_v41 = vld [vmem:[%s2894_s27 + $0xa8] sm:$0xff]  ;;  %v561_v42 = vld [vmem:[%s2894_s27 + $0xb8] sm:$0xff] }
  0xd0   : > { %615 = vmatpush1.msra.mxu0 %v574_v27  ;;  %776 = vmatpush1.msra.mxu1 %v576_v28  ;;  %v558_v43 = vld [vmem:[%s2894_s27 + $0xa0] sm:$0xff]  ;;  %v560_v44 = vld [vmem:[%s2894_s27 + $0xb0] sm:$0xff]  ;;  %v555_v45 = vld [vmem:[%s2894_s27 + $0x88] sm:$0xff] }
  0xd1   : > { %616 = vmatprep.subr.mxu0 %v571_v29  ;;  %777 = vmatprep.subr.mxu1 %v573_v30  ;;  %v557_v46 = vld [vmem:[%s2894_s27 + $0x98] sm:$0xff]  ;;  %v554_v47 = vld [vmem:[%s2894_s27 + $0x80] sm:$0xff]  ;;  %v556_v48 = vld [vmem:[%s2894_s27 + $0x90] sm:$0xff] }
  0xd2   : > { %617 = vmatpush1.msra.mxu0 %v570_v31  ;;  %778 = vmatpush1.msra.mxu1 %v572_v32  ;;  %v551_v49 = vld [vmem:[%s2894_s27 + $0x68] sm:$0xff]  ;;  %v553_v50 = vld [vmem:[%s2894_s27 + $0x78] sm:$0xff]  ;;  %v550_v51 = vld [vmem:[%s2894_s27 + $0x60] sm:$0xff] }
  0xd3   : > { %618 = vmatprep.subr.mxu0 %v567_v33  ;;  %779 = vmatprep.subr.mxu1 %v569_v34  ;;  %v552_v52 = vld [vmem:[%s2894_s27 + $0x70] sm:$0xff]  ;;  %v547_v53 = vld [vmem:[%s2894_s27 + $0x48] sm:$0xff]  ;;  %v549_v54 = vld [vmem:[%s2894_s27 + $0x58] sm:$0xff] }
  0xd4   : > { %619 = vmatpush1.msra.mxu0 %v566_v35  ;;  %780 = vmatpush1.msra.mxu1 %v568_v36  ;;  %v546_v55 = vld [vmem:[%s2894_s27 + $0x40] sm:$0xff]  ;;  %v548_v56 = vld [vmem:[%s2894_s27 + $0x50] sm:$0xff]  ;;  %v543_v57 = vld [vmem:[%s2894_s27 + $0x28] sm:$0xff] }
  0xd5   : > { %620 = vmatprep.subr.mxu0 %v563_v37  ;;  %781 = vmatprep.subr.mxu1 %v565_v38  ;;  %v545_v58 = vld [vmem:[%s2894_s27 + $0x38] sm:$0xff]  ;;  %v542_v59 = vld [vmem:[%s2894_s27 + $0x20] sm:$0xff]  ;;  %v544_v60 = vld [vmem:[%s2894_s27 + $0x30] sm:$0xff] }
  0xd6   : > { %621 = vmatpush1.msra.mxu0 %v562_v39  ;;  %782 = vmatpush1.msra.mxu1 %v564_v40  ;;  %v539_v61 = vld [vmem:[%s2894_s27 + $0x8] sm:$0xff]  ;;  %v541_v62 = vld [vmem:[%s2894_s27 + $0x18] sm:$0xff]  ;;  %v538_v63 = vld [vmem:[%s2894_s27] sm:$0xff] }
  0xd7   : > { %622 = vmatprep.subr.mxu0 %v559_v41  ;;  %783 = vmatprep.subr.mxu1 %v561_v42  ;;  %v540_v0 = vld [vmem:[%s2894_s27 + $0x10] sm:$0xff]  ;;  %v522_v1 = vld [vmem:[%s2886_s19] sm:$0xff]  ;;  %v523_v3 = vld [vmem:[%s2886_s19 + $0x8] sm:$0xff] }
  0xd8   : > { %623 = vmatpush1.msra.mxu0 %v558_v43  ;;  %784 = vmatpush1.msra.mxu1 %v560_v44  ;;  %v524_v4 = vld [vmem:[%s2886_s19 + $0x10] sm:$0xff]  ;;  %v525_v5 = vld [vmem:[%s2886_s19 + $0x18] sm:$0xff]  ;;  %v526_v6 = vld [vmem:[%s2886_s19 + $0x20] sm:$0xff] }
  0xd9   : > { %624 = vmatprep.subr.mxu0 %v555_v45  ;;  %785 = vmatprep.subr.mxu1 %v557_v46  ;;  %v527_v7 = vld [vmem:[%s2886_s19 + $0x28] sm:$0xff]  ;;  %v528_v8 = vld [vmem:[%s2886_s19 + $0x30] sm:$0xff]  ;;  %v529_v9 = vld [vmem:[%s2886_s19 + $0x38] sm:$0xff] }
  0xda   : > { %625 = vmatpush1.msra.mxu0 %v554_v47  ;;  %786 = vmatpush1.msra.mxu1 %v556_v48  ;;  %v530_v10 = vld [vmem:[%s2886_s19 + $0x40] sm:$0xff]  ;;  %v531_v11 = vld [vmem:[%s2886_s19 + $0x48] sm:$0xff]  ;;  %v532_v12 = vld [vmem:[%s2886_s19 + $0x50] sm:$0xff] }
  0xdb   : > { %626 = vmatprep.subr.mxu0 %v551_v49  ;;  %787 = vmatprep.subr.mxu1 %v553_v50  ;;  %v533_v13 = vld [vmem:[%s2886_s19 + $0x58] sm:$0xff]  ;;  %v534_v14 = vld [vmem:[%s2886_s19 + $0x60] sm:$0xff]  ;;  %v535_v15 = vld [vmem:[%s2886_s19 + $0x68] sm:$0xff] }
  0xdc   : > { %627 = vmatpush1.msra.mxu0 %v550_v51  ;;  %788 = vmatpush1.msra.mxu1 %v552_v52  ;;  %v536_v16 = vld [vmem:[%s2886_s19 + $0x70] sm:$0xff]  ;;  %v537_v17 = vld [vmem:[%s2886_s19 + $0x78] sm:$0xff]  ;;  %v463_v34 = vld [vmem:[#allocation2 + $0x168] sm:$0xff] }
  0xdd   : > { %628 = vmatprep.subr.mxu0 %v547_v53  ;;  %789 = vmatprep.subr.mxu1 %v549_v54  ;;  %v458_v18 = vld [vmem:[#allocation2 + $0xb0] sm:$0xff]  ;;  %v460_v19 = vld [vmem:[#allocation2 + $0xd8] sm:$0xff]  ;;  %v465_v35 = vld [vmem:[#allocation2 + $0x48] sm:$0xff] }
  0xde   : > { %629 = vmatpush1.msra.mxu0 %v546_v55  ;;  %790 = vmatpush1.msra.mxu1 %v548_v56  ;;  %v459_v22 = vld [vmem:[#allocation2 + $0x1b0] sm:$0xff]  ;;  %v461_v23 = vld [vmem:[#allocation2 + $0x18] sm:$0xff]  ;;  %v466_v40 = vld [vmem:[#allocation2 + $0x180] sm:$0xff] }
  0xdf   : > { %630 = vmatprep.subr.mxu0 %v543_v57  ;;  %791 = vmatprep.subr.mxu1 %v545_v58  ;;  %v462_v28 = vld [vmem:[#allocation2 + $0x50] sm:$0xff]  ;;  %v468_v41 = vld [vmem:[#allocation2 + $0x118] sm:$0xff]  ;;  %v470_v52 = vld [vmem:[#allocation2 + $0x120] sm:$0xff] }
  0xe0   : > { %631 = vmatpush1.msra.mxu0 %v542_v59  ;;  %792 = vmatpush1.msra.mxu1 %v544_v60  ;;  %v464_v29 = vld [vmem:[#allocation2 + $0x130] sm:$0xff]  ;;  %v469_v47 = vld [vmem:[#allocation2 + $0x98] sm:$0xff]  ;;  %v472_v53 = vld [vmem:[#allocation2 + $0x108] sm:$0xff] }
  0xe1   : > { %632 = vmatprep.subr.mxu0 %v539_v61  ;;  %793 = vmatprep.subr.mxu1 %v541_v62  ;;  %v467_v46 = vld [vmem:[#allocation2 + $0x110] sm:$0xff]  ;;  %v473_v59 = vld [vmem:[#allocation2 + $0x60] sm:$0xff] }
  0xe2   : > { %633 = vmatpush1.msra.mxu0 %v538_v63  ;;  %666 = vmatprep.mubr.f32.mxu0 %v2571_v2  ;;  %v471_v58 = vld [vmem:[#allocation2 + $0x150] sm:$0xff] }
  0xe3   : > { %794 = vmatpush1.msra.mxu1 %v540_v0  ;;  %827 = vmatprep.mubr.f32.mxu1 %v2571_v2  ;;  %v474_v0 = vld [vmem:[#allocation2 + $0xe0] sm:$0xff] }
  0xe4   : > { %667 = vmatmul.mubr.f32.vlgmr.msra.gmra.mxu0 %v522_v1  ;;  %828 = vmatmul.mubr.f32.vlgmr.msra.gmra.mxu1 %v522_v1  ;;  %v476_v1 = vld [vmem:[#allocation2 + $0x138] sm:$0xff] }
  0xe5   : > { %672 = vmatprep.mubr.f32.mxu0 %v2571_v2  ;;  %833 = vmatprep.mubr.f32.mxu1 %v2571_v2 }
  0xe8   : > { %673 = vmatmul.mubr.f32.gmra.mxu0 %v523_v3  ;;  %834 = vmatmul.mubr.f32.gmra.mxu1 %v523_v3 }
  0xe9   : > { %678 = vmatprep.mubr.f32.mxu0 %v2571_v2  ;;  %839 = vmatprep.mubr.f32.mxu1 %v2571_v2 }
  0xec   : > { %679 = vmatmul.mubr.f32.gmra.mxu0 %v524_v4  ;;  %840 = vmatmul.mubr.f32.gmra.mxu1 %v524_v4 }
  0xed   : > { %684 = vmatprep.mubr.f32.mxu0 %v2571_v2  ;;  %845 = vmatprep.mubr.f32.mxu1 %v2571_v2 }
  0xf0   : > { %685 = vmatmul.mubr.f32.gmra.mxu0 %v525_v5  ;;  %846 = vmatmul.mubr.f32.gmra.mxu1 %v525_v5 }
  0xf1   : > { %690 = vmatprep.mubr.f32.mxu0 %v2571_v2  ;;  %851 = vmatprep.mubr.f32.mxu1 %v2571_v2 }
  0xf4   : > { %691 = vmatmul.mubr.f32.gmra.mxu0 %v526_v6  ;;  %852 = vmatmul.mubr.f32.gmra.mxu1 %v526_v6  ;;  %v475_v6 = vld [vmem:[#allocation2 + $0x188] sm:$0xff] }
  0xf5   : > { %696 = vmatprep.mubr.f32.mxu0 %v2571_v2  ;;  %857 = vmatprep.mubr.f32.mxu1 %v2571_v2 }
  0xf8   : > { %697 = vmatmul.mubr.f32.gmra.mxu0 %v527_v7  ;;  %858 = vmatmul.mubr.f32.gmra.mxu1 %v527_v7  ;;  %v477_v7 = vld [vmem:[#allocation2 + $0x140] sm:$0xff] }
  0xf9   : > { %702 = vmatprep.mubr.f32.mxu0 %v2571_v2  ;;  %863 = vmatprep.mubr.f32.mxu1 %v2571_v2 }
  0xfc   : > { %703 = vmatmul.mubr.f32.gmra.mxu0 %v528_v8  ;;  %864 = vmatmul.mubr.f32.gmra.mxu1 %v528_v8 }
  0xfd   : > { %708 = vmatprep.mubr.f32.mxu0 %v2571_v2  ;;  %869 = vmatprep.mubr.f32.mxu1 %v2571_v2 }
 0x100   : > { %709 = vmatmul.mubr.f32.gmra.mxu0 %v529_v9  ;;  %870 = vmatmul.mubr.f32.gmra.mxu1 %v529_v9 }
 0x101   : > { %714 = vmatprep.mubr.f32.mxu0 %v2571_v2  ;;  %875 = vmatprep.mubr.f32.mxu1 %v2571_v2 }
 0x104   : > { %715 = vmatmul.mubr.f32.gmra.mxu0 %v530_v10  ;;  %876 = vmatmul.mubr.f32.gmra.mxu1 %v530_v10 }
 0x105   : > { %720 = vmatprep.mubr.f32.mxu0 %v2571_v2  ;;  %881 = vmatprep.mubr.f32.mxu1 %v2571_v2 }
 0x108   : > { %721 = vmatmul.mubr.f32.gmra.mxu0 %v531_v11  ;;  %882 = vmatmul.mubr.f32.gmra.mxu1 %v531_v11 }
 0x109   : > { %726 = vmatprep.mubr.f32.mxu0 %v2571_v2  ;;  %887 = vmatprep.mubr.f32.mxu1 %v2571_v2 }
 0x10c   : > { %727 = vmatmul.mubr.f32.gmra.mxu0 %v532_v12  ;;  %888 = vmatmul.mubr.f32.gmra.mxu1 %v532_v12  ;;  %v478_v12 = vld [vmem:[#allocation2 + $0x80] sm:$0xff] }
 0x10d   : > { %732 = vmatprep.mubr.f32.mxu0 %v2571_v2  ;;  %893 = vmatprep.mubr.f32.mxu1 %v2571_v2 }
 0x110   : > { %733 = vmatmul.mubr.f32.gmra.mxu0 %v533_v13  ;;  %894 = vmatmul.mubr.f32.gmra.mxu1 %v533_v13  ;;  %v480_v13 = vld [vmem:[#allocation2 + $0x1b8] sm:$0xff] }
 0x111   : > { %738 = vmatprep.mubr.f32.mxu0 %v2571_v2  ;;  %899 = vmatprep.mubr.f32.mxu1 %v2571_v2 }
 0x114   : > { %739 = vmatmul.mubr.f32.gmra.mxu0 %v534_v14  ;;  %900 = vmatmul.mubr.f32.gmra.mxu1 %v534_v14 }
 0x115   : > { %744 = vmatprep.mubr.f32.mxu0 %v2571_v2  ;;  %905 = vmatprep.mubr.f32.mxu1 %v2571_v2 }
 0x118   : > { %745 = vmatmul.mubr.f32.gmra.mxu0 %v535_v15  ;;  %906 = vmatmul.mubr.f32.gmra.mxu1 %v535_v15 }
 0x119   : > { %750 = vmatprep.mubr.f32.mxu0 %v2571_v2  ;;  %911 = vmatprep.mubr.f32.mxu1 %v2571_v2 }
 0x11c   : > { %751 = vmatmul.mubr.f32.gmra.mxu0 %v536_v16  ;;  %912 = vmatmul.mubr.f32.gmra.mxu1 %v536_v16 }
 0x11d   : > { %756 = vmatprep.mubr.f32.mxu0 %v2571_v2  ;;  %917 = vmatprep.mubr.f32.mxu1 %v2571_v2 }
 0x120   : > { %757 = vmatmul.mubr.f32.gmra.mxu0 %v537_v17  ;;  %918 = vmatmul.mubr.f32.gmra.mxu1 %v537_v17 }
 0x1a4   : > { %v668_v20 = vpop.f32.mrf.mxu0  ;;  %v829_v21 = vpop.f32.mrf.mxu1 }
 0x1a5   : > { %v924_v24 = vadd.f32 %v668_v20, %v458_v18  ;;  %v926_v25 = vadd.f32 %v829_v21, %v460_v19  ;;  %v479_v18 = vld [vmem:[#allocation2 + $0x1a8] sm:$0xff] }
 0x1a6   : > { %v670_v26 = vpop.f32.mrf.mxu0  ;;  %v831_v27 = vpop.f32.mrf.mxu1  ;;  %v481_v19 = vld [vmem:[#allocation2 + $0x28] sm:$0xff] }
 0x1a7   : > { %988 = vst [vmem:[#allocation2 + $0xb0] sm:$0xff] %v924_v24  ;;  %990 = vst [vmem:[#allocation2 + $0xd8] sm:$0xff] %v926_v25  ;;  %v925_v30 = vadd.f32 %v670_v26, %v459_v22  ;;  %v927_v31 = vadd.f32 %v831_v27, %v461_v23  ;;  %v482_v24 = vld [vmem:[#allocation2 + $0x1e8] sm:$0xff]  ;;  %v484_v25 = vld [vmem:[#allocation2 + $0x160] sm:$0xff] }
 0x1a8   : > { %v674_v32 = vpop.f32.mrf.mxu0  ;;  %v835_v33 = vpop.f32.mrf.mxu1 }
 0x1a9   : > { %989 = vst [vmem:[#allocation2 + $0x1b0] sm:$0xff] %v925_v30  ;;  %991 = vst [vmem:[#allocation2 + $0x18] sm:$0xff] %v927_v31  ;;  %v928_v36 = vadd.f32 %v674_v32, %v462_v28  ;;  %v930_v37 = vadd.f32 %v835_v33, %v464_v29  ;;  %v483_v30 = vld [vmem:[#allocation2 + $0xf8] sm:$0xff]  ;;  %v485_v31 = vld [vmem:[#allocation2 + $0x30] sm:$0xff] }
 0x1aa   : > { %v676_v38 = vpop.f32.mrf.mxu0  ;;  %v837_v39 = vpop.f32.mrf.mxu1 }
 0x1ab   : > { %992 = vst [vmem:[#allocation2 + $0x50] sm:$0xff] %v928_v36  ;;  %994 = vst [vmem:[#allocation2 + $0x130] sm:$0xff] %v930_v37  ;;  %v929_v42 = vadd.f32 %v676_v38, %v463_v34  ;;  %v931_v43 = vadd.f32 %v837_v39, %v465_v35  ;;  %v486_v36 = vld [vmem:[#allocation2 + $0x1e0] sm:$0xff]  ;;  %v488_v37 = vld [vmem:[#allocation2 + $0xf0] sm:$0xff] }
 0x1ac   : > { %v680_v44 = vpop.f32.mrf.mxu0  ;;  %v841_v45 = vpop.f32.mrf.mxu1 }
 0x1ad   : > { %993 = vst [vmem:[#allocation2 + $0x168] sm:$0xff] %v929_v42  ;;  %995 = vst [vmem:[#allocation2 + $0x48] sm:$0xff] %v931_v43  ;;  %v932_v48 = vadd.f32 %v680_v44, %v466_v40  ;;  %v934_v49 = vadd.f32 %v841_v45, %v468_v41  ;;  %v487_v42 = vld [vmem:[#allocation2] sm:$0xff]  ;;  %v489_v43 = vld [vmem:[#allocation2 + $0x8] sm:$0xff] }
 0x1ae   : > { %v682_v50 = vpop.f32.mrf.mxu0  ;;  %v843_v51 = vpop.f32.mrf.mxu1 }
 0x1af   : > { %996 = vst [vmem:[#allocation2 + $0x180] sm:$0xff] %v932_v48  ;;  %998 = vst [vmem:[#allocation2 + $0x118] sm:$0xff] %v934_v49  ;;  %v933_v54 = vadd.f32 %v682_v50, %v467_v46  ;;  %v935_v55 = vadd.f32 %v843_v51, %v469_v47  ;;  %v490_v48 = vld [vmem:[#allocation2 + $0x148] sm:$0xff]  ;;  %v492_v49 = vld [vmem:[#allocation2 + $0x100] sm:$0xff] }
 0x1b0   : > { %v686_v56 = vpop.f32.mrf.mxu0  ;;  %v847_v57 = vpop.f32.mrf.mxu1 }
 0x1b1   : > { %997 = vst [vmem:[#allocation2 + $0x110] sm:$0xff] %v933_v54  ;;  %999 = vst [vmem:[#allocation2 + $0x98] sm:$0xff] %v935_v55  ;;  %v936_v60 = vadd.f32 %v686_v56, %v470_v52  ;;  %v938_v61 = vadd.f32 %v847_v57, %v472_v53  ;;  %v491_v54 = vld [vmem:[#allocation2 + $0x1d0] sm:$0xff]  ;;  %v493_v55 = vld [vmem:[#allocation2 + $0xc8] sm:$0xff] }
 0x1b2   : > { %v688_v62 = vpop.f32.mrf.mxu0  ;;  %v849_v63 = vpop.f32.mrf.mxu1 }
 0x1b3   : > { %1000 = vst [vmem:[#allocation2 + $0x120] sm:$0xff] %v936_v60  ;;  %1002 = vst [vmem:[#allocation2 + $0x108] sm:$0xff] %v938_v61  ;;  %v937_v2 = vadd.f32 %v688_v62, %v471_v58  ;;  %v939_v3 = vadd.f32 %v849_v63, %v473_v59  ;;  %v494_v60 = vld [vmem:[#allocation2 + $0x40] sm:$0xff] }
 0x1b4   : > { %v692_v4 = vpop.f32.mrf.mxu0  ;;  %v853_v5 = vpop.f32.mrf.mxu1  ;;  %v496_v61 = vld [vmem:[#allocation2 + $0x20] sm:$0xff] }
 0x1b5   : > { %1001 = vst [vmem:[#allocation2 + $0x150] sm:$0xff] %v937_v2  ;;  %1003 = vst [vmem:[#allocation2 + $0x60] sm:$0xff] %v939_v3  ;;  %v940_v8 = vadd.f32 %v692_v4, %v474_v0  ;;  %v942_v9 = vadd.f32 %v853_v5, %v476_v1  ;;  %v495_v2 = vld [vmem:[#allocation2 + $0x1f8] sm:$0xff]  ;;  %v497_v3 = vld [vmem:[#allocation2 + $0x128] sm:$0xff] }
 0x1b6   : > { %v694_v10 = vpop.f32.mrf.mxu0  ;;  %v855_v11 = vpop.f32.mrf.mxu1 }
 0x1b7   : > { %1004 = vst [vmem:[#allocation2 + $0xe0] sm:$0xff] %v940_v8  ;;  %1006 = vst [vmem:[#allocation2 + $0x138] sm:$0xff] %v942_v9  ;;  %v941_v14 = vadd.f32 %v694_v10, %v475_v6  ;;  %v943_v15 = vadd.f32 %v855_v11, %v477_v7  ;;  %v498_v8 = vld [vmem:[#allocation2 + $0x1a0] sm:$0xff]  ;;  %v500_v9 = vld [vmem:[#allocation2 + $0xe8] sm:$0xff] }
 0x1b8   : > { %v698_v16 = vpop.f32.mrf.mxu0  ;;  %v859_v17 = vpop.f32.mrf.mxu1 }
 0x1b9   : > { %1005 = vst [vmem:[#allocation2 + $0x188] sm:$0xff] %v941_v14  ;;  %1007 = vst [vmem:[#allocation2 + $0x140] sm:$0xff] %v943_v15  ;;  %v944_v20 = vadd.f32 %v698_v16, %v478_v12  ;;  %v946_v21 = vadd.f32 %v859_v17, %v480_v13  ;;  %v499_v14 = vld [vmem:[#allocation2 + $0x1f0] sm:$0xff]  ;;  %v501_v15 = vld [vmem:[#allocation2 + $0x78] sm:$0xff] }
 0x1ba   : > { %v700_v22 = vpop.f32.mrf.mxu0  ;;  %v861_v23 = vpop.f32.mrf.mxu1 }
 0x1bb   : > { %1008 = vst [vmem:[#allocation2 + $0x80] sm:$0xff] %v944_v20  ;;  %1010 = vst [vmem:[#allocation2 + $0x1b8] sm:$0xff] %v946_v21  ;;  %v945_v26 = vadd.f32 %v700_v22, %v479_v18  ;;  %v947_v27 = vadd.f32 %v861_v23, %v481_v19  ;;  %v502_v20 = vld [vmem:[#allocation2 + $0x70] sm:$0xff]  ;;  %v504_v21 = vld [vmem:[#allocation2 + $0x1d8] sm:$0xff] }
 0x1bc   : > { %v704_v28 = vpop.f32.mrf.mxu0  ;;  %v865_v29 = vpop.f32.mrf.mxu1 }
 0x1bd   : > { %1009 = vst [vmem:[#allocation2 + $0x1a8] sm:$0xff] %v945_v26  ;;  %1011 = vst [vmem:[#allocation2 + $0x28] sm:$0xff] %v947_v27  ;;  %v948_v32 = vadd.f32 %v704_v28, %v482_v24  ;;  %v950_v33 = vadd.f32 %v865_v29, %v484_v25  ;;  %v503_v26 = vld [vmem:[#allocation2 + $0x90] sm:$0xff] }
 0x1be   : > { %v706_v34 = vpop.f32.mrf.mxu0  ;;  %v867_v35 = vpop.f32.mrf.mxu1  ;;  %v505_v27 = vld [vmem:[#allocation2 + $0xd0] sm:$0xff] }
 0x1bf   : > { %1012 = vst [vmem:[#allocation2 + $0x1e8] sm:$0xff] %v948_v32  ;;  %1014 = vst [vmem:[#allocation2 + $0x160] sm:$0xff] %v950_v33  ;;  %v949_v38 = vadd.f32 %v706_v34, %v483_v30  ;;  %v951_v39 = vadd.f32 %v867_v35, %v485_v31  ;;  %v506_v32 = vld [vmem:[#allocation2 + $0xb8] sm:$0xff]  ;;  %v508_v33 = vld [vmem:[#allocation2 + $0xa8] sm:$0xff] }
 0x1c0   : > { %v710_v40 = vpop.f32.mrf.mxu0  ;;  %v871_v41 = vpop.f32.mrf.mxu1 }
 0x1c1   : > { %1013 = vst [vmem:[#allocation2 + $0xf8] sm:$0xff] %v949_v38  ;;  %1015 = vst [vmem:[#allocation2 + $0x30] sm:$0xff] %v951_v39  ;;  %v952_v44 = vadd.f32 %v710_v40, %v486_v36  ;;  %v954_v45 = vadd.f32 %v871_v41, %v488_v37  ;;  %v507_v38 = vld [vmem:[#allocation2 + $0x88] sm:$0xff] }
 0x1c2   : > { %v712_v46 = vpop.f32.mrf.mxu0  ;;  %v873_v47 = vpop.f32.mrf.mxu1  ;;  %v509_v39 = vld [vmem:[#allocation2 + $0x1c8] sm:$0xff] }
 0x1c3   : > { %1016 = vst [vmem:[#allocation2 + $0x1e0] sm:$0xff] %v952_v44  ;;  %1018 = vst [vmem:[#allocation2 + $0xf0] sm:$0xff] %v954_v45  ;;  %v953_v50 = vadd.f32 %v712_v46, %v487_v42  ;;  %v955_v51 = vadd.f32 %v873_v47, %v489_v43  ;;  %v510_v44 = vld [vmem:[#allocation2 + $0x170] sm:$0xff]  ;;  %v512_v45 = vld [vmem:[#allocation2 + $0x68] sm:$0xff] }
 0x1c4   : > { %v716_v52 = vpop.f32.mrf.mxu0  ;;  %v877_v53 = vpop.f32.mrf.mxu1 }
 0x1c5   : > { %1017 = vst [vmem:[#allocation2] sm:$0xff] %v953_v50  ;;  %1019 = vst [vmem:[#allocation2 + $0x8] sm:$0xff] %v955_v51  ;;  %v956_v56 = vadd.f32 %v716_v52, %v490_v48  ;;  %v958_v57 = vadd.f32 %v877_v53, %v492_v49  ;;  %v511_v50 = vld [vmem:[#allocation2 + $0x178] sm:$0xff]  ;;  %v513_v51 = vld [vmem:[#allocation2 + $0x190] sm:$0xff] }
 0x1c6   : > { %v718_v58 = vpop.f32.mrf.mxu0  ;;  %v879_v59 = vpop.f32.mrf.mxu1 }
 0x1c7   : > { %1020 = vst [vmem:[#allocation2 + $0x148] sm:$0xff] %v956_v56  ;;  %1022 = vst [vmem:[#allocation2 + $0x100] sm:$0xff] %v958_v57  ;;  %v957_v62 = vadd.f32 %v718_v58, %v491_v54  ;;  %v959_v63 = vadd.f32 %v879_v59, %v493_v55  ;;  %v514_v56 = vld [vmem:[#allocation2 + $0x198] sm:$0xff]  ;;  %v516_v57 = vld [vmem:[#allocation2 + $0xc0] sm:$0xff] }
 0x1c8   : > { %v722_v0 = vpop.f32.mrf.mxu0  ;;  %v883_v1 = vpop.f32.mrf.mxu1 }
 0x1c9   : > { %1021 = vst [vmem:[#allocation2 + $0x1d0] sm:$0xff] %v957_v62  ;;  %1023 = vst [vmem:[#allocation2 + $0xc8] sm:$0xff] %v959_v63  ;;  %v960_v4 = vadd.f32 %v722_v0, %v494_v60  ;;  %v962_v5 = vadd.f32 %v883_v1, %v496_v61  ;;  %v515_v62 = vld [vmem:[#allocation2 + $0x38] sm:$0xff]  ;;  %v517_v63 = vld [vmem:[#allocation2 + $0x1c0] sm:$0xff] }
 0x1ca   : > { %v724_v6 = vpop.f32.mrf.mxu0  ;;  %v885_v7 = vpop.f32.mrf.mxu1 }
 0x1cb   : > { %1024 = vst [vmem:[#allocation2 + $0x40] sm:$0xff] %v960_v4  ;;  %1026 = vst [vmem:[#allocation2 + $0x20] sm:$0xff] %v962_v5  ;;  %v961_v10 = vadd.f32 %v724_v6, %v495_v2  ;;  %v963_v11 = vadd.f32 %v885_v7, %v497_v3  ;;  %v518_v4 = vld [vmem:[#allocation2 + $0x158] sm:$0xff] }
 0x1cc   : > { %v728_v12 = vpop.f32.mrf.mxu0  ;;  %v889_v13 = vpop.f32.mrf.mxu1  ;;  %v520_v5 = vld [vmem:[#allocation2 + $0x58] sm:$0xff] }
 0x1cd   : > { %1025 = vst [vmem:[#allocation2 + $0x1f8] sm:$0xff] %v961_v10  ;;  %1027 = vst [vmem:[#allocation2 + $0x128] sm:$0xff] %v963_v11  ;;  %v964_v16 = vadd.f32 %v728_v12, %v498_v8  ;;  %v966_v17 = vadd.f32 %v889_v13, %v500_v9  ;;  %v519_v10 = vld [vmem:[#allocation2 + $0x10] sm:$0xff]  ;;  %v521_v11 = vld [vmem:[#allocation2 + $0xa0] sm:$0xff] }
 0x1ce   : > { %v730_v18 = vpop.f32.mrf.mxu0  ;;  %v891_v19 = vpop.f32.mrf.mxu1 }
 0x1cf   : > { %1028 = vst [vmem:[#allocation2 + $0x1a0] sm:$0xff] %v964_v16  ;;  %1030 = vst [vmem:[#allocation2 + $0xe8] sm:$0xff] %v966_v17  ;;  %v965_v22 = vadd.f32 %v730_v18, %v499_v14  ;;  %v967_v23 = vadd.f32 %v891_v19, %v501_v15 }
 0x1d0   : > { %v734_v24 = vpop.f32.mrf.mxu0  ;;  %v895_v25 = vpop.f32.mrf.mxu1 }
 0x1d1   : > { %1029 = vst [vmem:[#allocation2 + $0x1f0] sm:$0xff] %v965_v22  ;;  %1031 = vst [vmem:[#allocation2 + $0x78] sm:$0xff] %v967_v23  ;;  %v968_v28 = vadd.f32 %v734_v24, %v502_v20  ;;  %v970_v29 = vadd.f32 %v895_v25, %v504_v21 }
 0x1d2   : > { %v736_v30 = vpop.f32.mrf.mxu0  ;;  %v897_v31 = vpop.f32.mrf.mxu1 }
 0x1d3   : > { %1032 = vst [vmem:[#allocation2 + $0x70] sm:$0xff] %v968_v28  ;;  %1034 = vst [vmem:[#allocation2 + $0x1d8] sm:$0xff] %v970_v29  ;;  %v969_v34 = vadd.f32 %v736_v30, %v503_v26  ;;  %v971_v35 = vadd.f32 %v897_v31, %v505_v27 }
 0x1d4   : > { %v740_v36 = vpop.f32.mrf.mxu0  ;;  %v901_v37 = vpop.f32.mrf.mxu1 }
 0x1d5   : > { %1033 = vst [vmem:[#allocation2 + $0x90] sm:$0xff] %v969_v34  ;;  %1035 = vst [vmem:[#allocation2 + $0xd0] sm:$0xff] %v971_v35  ;;  %v972_v40 = vadd.f32 %v740_v36, %v506_v32  ;;  %v974_v41 = vadd.f32 %v901_v37, %v508_v33 }
 0x1d6   : > { %v742_v42 = vpop.f32.mrf.mxu0  ;;  %v903_v43 = vpop.f32.mrf.mxu1 }
 0x1d7   : > { %1036 = vst [vmem:[#allocation2 + $0xb8] sm:$0xff] %v972_v40  ;;  %1038 = vst [vmem:[#allocation2 + $0xa8] sm:$0xff] %v974_v41  ;;  %v973_v46 = vadd.f32 %v742_v42, %v507_v38  ;;  %v975_v47 = vadd.f32 %v903_v43, %v509_v39 }
 0x1d8   : > { %v746_v48 = vpop.f32.mrf.mxu0  ;;  %v907_v49 = vpop.f32.mrf.mxu1 }
 0x1d9   : > { %1037 = vst [vmem:[#allocation2 + $0x88] sm:$0xff] %v973_v46  ;;  %1039 = vst [vmem:[#allocation2 + $0x1c8] sm:$0xff] %v975_v47  ;;  %v976_v52 = vadd.f32 %v746_v48, %v510_v44  ;;  %v978_v53 = vadd.f32 %v907_v49, %v512_v45 }
 0x1da   : > { %v748_v54 = vpop.f32.mrf.mxu0  ;;  %v909_v55 = vpop.f32.mrf.mxu1 }
 0x1db   : > { %1040 = vst [vmem:[#allocation2 + $0x170] sm:$0xff] %v976_v52  ;;  %1042 = vst [vmem:[#allocation2 + $0x68] sm:$0xff] %v978_v53  ;;  %v977_v58 = vadd.f32 %v748_v54, %v511_v50  ;;  %v979_v59 = vadd.f32 %v909_v55, %v513_v51 }
 0x1dc   : > { %v752_v60 = vpop.f32.mrf.mxu0  ;;  %v913_v61 = vpop.f32.mrf.mxu1 }
 0x1dd   : > { %1041 = vst [vmem:[#allocation2 + $0x178] sm:$0xff] %v977_v58  ;;  %1043 = vst [vmem:[#allocation2 + $0x190] sm:$0xff] %v979_v59  ;;  %v980_v0 = vadd.f32 %v752_v60, %v514_v56  ;;  %v982_v1 = vadd.f32 %v913_v61, %v516_v57 }
 0x1de   : > { %v754_v2 = vpop.f32.mrf.mxu0  ;;  %v915_v3 = vpop.f32.mrf.mxu1 }
 0x1df   : > { %1044 = vst [vmem:[#allocation2 + $0x198] sm:$0xff] %v980_v0  ;;  %1046 = vst [vmem:[#allocation2 + $0xc0] sm:$0xff] %v982_v1  ;;  %v981_v6 = vadd.f32 %v754_v2, %v515_v62  ;;  %v983_v7 = vadd.f32 %v915_v3, %v517_v63 }
 0x1e0   : > { %v758_v8 = vpop.f32.mrf.mxu0  ;;  %v919_v9 = vpop.f32.mrf.mxu1 }
 0x1e1   : > { %1045 = vst [vmem:[#allocation2 + $0x38] sm:$0xff] %v981_v6  ;;  %1047 = vst [vmem:[#allocation2 + $0x1c0] sm:$0xff] %v983_v7  ;;  %v984_v12 = vadd.f32 %v758_v8, %v518_v4  ;;  %v986_v13 = vadd.f32 %v919_v9, %v520_v5  ;;  %1055 = sbr.rel (%p2017_p11) target bundleno = 699 (0x2bb), region = 60 }
 0x1e2   : > { %v760_v14 = vpop.f32.mrf.mxu0  ;;  %v921_v15 = vpop.f32.mrf.mxu1 }
 0x1e3   : > { %1048 = vst [vmem:[#allocation2 + $0x158] sm:$0xff] %v984_v12  ;;  %1050 = vst [vmem:[#allocation2 + $0x58] sm:$0xff] %v986_v13  ;;  %v985_v16 = vadd.f32 %v760_v14, %v519_v10  ;;  %v987_v17 = vadd.f32 %v921_v15, %v521_v11 }
 0x1e5   : > { %1049 = vst [vmem:[#allocation2 + $0x10] sm:$0xff] %v985_v16  ;;  %1051 = vst [vmem:[#allocation2 + $0xa0] sm:$0xff] %v987_v17 }
 0x1e6   : > { %v3098_v18 = vld [vmem:[#allocation2 + $0x180] sm:$0xff]  ;;  %v3100_v19 = vld [vmem:[#allocation2 + $0xb0] sm:$0xff]  ;;  %s2572_s26 = smov 64   ;;  %v3124_v25 = vld [vmem:[#allocation2 + $0x1e8] sm:$0xff] }
 0x1e7   : > { %1129 = vrot.lane.b32.xlu1 %v3098_v18, %s2572_s26  ;;  %1125 = vrot.lane.b32.xlu0 %v3100_v19, %s2572_s26  ;;  %v3106_v20 = vld [vmem:[#allocation2 + $0x120] sm:$0xff]  ;;  %v3108_v21 = vld [vmem:[#allocation2 + $0x50] sm:$0xff]  ;;  %v3135_v28 = vld [vmem:[#allocation2 + $0x148] sm:$0xff] }
 0x1e8   : > { %v3114_v22 = vld [vmem:[#allocation2 + $0x80] sm:$0xff]  ;;  %v3138_v29 = vld [vmem:[%s2904_s7 + $0x10] sm:$0xff]  ;;  %v3141_v30 = vld [vmem:[%s2904_s7 + $0x18] sm:$0xff] }
 0x1e9   : > { %v3116_v23 = vld [vmem:[#allocation2 + $0xe0] sm:$0xff]  ;;  %v3144_v31 = vld [vmem:[%s2904_s7 + $0x28] sm:$0xff]  ;;  %v3150_v33 = vld [vmem:[%s2904_s7 + $0x38] sm:$0xff] }
 0x1ea   : > { %v3122_v24 = vld [vmem:[#allocation2 + $0x1e0] sm:$0xff]  ;;  %v3153_v34 = vld [vmem:[%s2904_s7 + $0x30] sm:$0xff]  ;;  %v3156_v35 = vld [vmem:[%s2904_s7 + $0x48] sm:$0xff] }
 0x1eb   : > { %1131 = vrot.lane.b32.xlu1 %v3106_v20, %s2572_s26  ;;  %1127 = vrot.lane.b32.xlu0 %v3108_v21, %s2572_s26  ;;  %v3131_v26 = vld [vmem:[%s2904_s7] sm:$0xff]  ;;  %v3158_v36 = vld [vmem:[#allocation2 + $0x70] sm:$0xff]  ;;  %v3162_v38 = vld [vmem:[#allocation2 + $0xd8] sm:$0xff] }
 0x1ec   : > { %v3133_v27 = vld [vmem:[#allocation2 + $0x40] sm:$0xff]  ;;  %v3164_v39 = vld [vmem:[#allocation2 + $0x108] sm:$0xff]  ;;  %v3172_v40 = vmul.f32 %v3162_v38, %v3131_v26  ;;  %v1431_v42 = vld [vmem:[#allocation2 + $0x118] sm:$0xff] }
 0x1ed   : > { %v3147_v32 = vld [vmem:[%s2904_s7 + $0x20] sm:$0xff]  ;;  %v3176_v41 = vmul.f32 %v3164_v39, %v3141_v30  ;;  %v1434_v43 = vld [vmem:[#allocation2 + $0x1b8] sm:$0xff]  ;;  %v3179_v45 = vmul.f32 %v1431_v42, %v3138_v29  ;;  %v1436_v48 = vld [vmem:[#allocation2 + $0xf0] sm:$0xff] }
 0x1ee   : > { %v3160_v37 = vld [vmem:[#allocation2 + $0x1a0] sm:$0xff]  ;;  %3744 = vst [vmem:[#allocation33_spill] sm:$0xff] %v3172_v40  ;;  %v1433_v44 = vld [vmem:[#allocation2 + $0x138] sm:$0xff]  ;;  %v3182_v46 = vmul.f32 %v1434_v43, %v3144_v31  ;;  %v3191_v52 = vmul.f32 %v1436_v48, %v3150_v33  ;;  %v3206_v57 = vld [vmem:[#allocation2 + $0x170] sm:$0xff] }
 0x1ef   : > { %1135 = vrot.lane.b32.xlu1 %v3114_v22, %s2572_s26  ;;  %1133 = vrot.lane.b32.xlu0 %v3116_v23, %s2572_s26  ;;  %3745 = vst [vmem:[#allocation34_spill] sm:$0xff] %v3176_v41  ;;  %3746 = vst [vmem:[#allocation35_spill] sm:$0xff] %v3179_v45  ;;  %v3185_v47 = vmul.f32 %v1433_v44, %v3147_v32  ;;  %v1435_v49 = vld [vmem:[#allocation2 + $0x160] sm:$0xff]  ;;  %v3208_v58 = vld [vmem:[#allocation2 + $0xb8] sm:$0xff] }
 0x1f0   : > { %3747 = vst [vmem:[#allocation36_spill] sm:$0xff] %v3182_v46  ;;  %v1438_v50 = vld [vmem:[#allocation2 + $0x20] sm:$0xff]  ;;  %3749 = vst [vmem:[#allocation38_spill] sm:$0xff] %v3191_v52  ;;  %v3194_v53 = vmul.f32 %v1435_v49, %v3153_v34  ;;  %v3214_v59 = vld [vmem:[#allocation2 + $0x158] sm:$0xff] }
 0x1f1   : > { %3748 = vst [vmem:[#allocation37_spill] sm:$0xff] %v3185_v47  ;;  %v3188_v51 = vld [vmem:[%s2904_s7 + $0x40] sm:$0xff]  ;;  %v3197_v54 = vmul.f32 %v1438_v50, %v3156_v35  ;;  %v3216_v60 = vld [vmem:[#allocation2 + $0x198] sm:$0xff]  ;;  %v3222_v61 = vld [vmem:[#allocation2 + $0x168] sm:$0xff] }
 0x1f2   : > { %3750 = vst [vmem:[#allocation39_spill] sm:$0xff] %v3194_v53  ;;  %v1437_v55 = vld [vmem:[#allocation2 + $0x100] sm:$0xff]  ;;  %v3224_v62 = vld [vmem:[#allocation2 + $0x1b0] sm:$0xff]  ;;  %v3238_v1 = vld [vmem:[#allocation2 + $0x1a8] sm:$0xff] }
 0x1f3   : > { %1139 = vrot.lane.b32.xlu1 %v3122_v24, %s2572_s26  ;;  %1137 = vrot.lane.b32.xlu0 %v3124_v25, %s2572_s26  ;;  %3751 = vst [vmem:[#allocation40_spill] sm:$0xff] %v3197_v54  ;;  %v3200_v56 = vmul.f32 %v1437_v55, %v3188_v51  ;;  %v3230_v63 = vld [vmem:[#allocation2 + $0x150] sm:$0xff]  ;;  %v3240_v2 = vld [vmem:[#allocation2 + $0x188] sm:$0xff]  ;;  %v3246_v3 = vld [vmem:[#allocation2] sm:$0xff] }
 0x1f4   : > { %v3232_v0 = vld [vmem:[#allocation2 + $0x110] sm:$0xff]  ;;  %v3248_v4 = vld [vmem:[#allocation2 + $0xf8] sm:$0xff]  ;;  %v3272_v10 = vld [vmem:[#allocation2 + $0x88] sm:$0xff] }
 0x1f5   : > { %3752 = vst [vmem:[#allocation41_spill] sm:$0xff] %v3200_v56  ;;  %v3254_v5 = vld [vmem:[#allocation2 + $0x1f8] sm:$0xff]  ;;  %v3256_v6 = vld [vmem:[#allocation2 + $0x1d0] sm:$0xff]  ;;  %v3303_v15 = vld [vmem:[#allocation2 + $0xe8] sm:$0xff] }
 0x1f6   : > { %v3262_v7 = vld [vmem:[#allocation2 + $0x90] sm:$0xff]  ;;  %v3270_v9 = vld [vmem:[#allocation2 + $0x178] sm:$0xff]  ;;  %3755 = vst [vmem:[#allocation44_spill] sm:$0xff] %v3303_v15  ;;  %v1601_v17 = vld [vmem:[#allocation2 + $0x48] sm:$0xff] }
 0x1f7   : > { %1143 = vrot.lane.b32.xlu1 %v3133_v27, %s2572_s26  ;;  %1141 = vrot.lane.b32.xlu0 %v3135_v28, %s2572_s26  ;;  %v3264_v8 = vld [vmem:[#allocation2 + $0x1f0] sm:$0xff]  ;;  %v3280_v12 = vld [vmem:[#allocation2 + $0x38] sm:$0xff]  ;;  %2099 = vst [vmem:[%s2918_s8 + $0x188] sm:$0xff] %v1601_v17  ;;  %v1612_v56 = vld [vmem:[#allocation2 + $0x1c8] sm:$0xff] }
 0x1f8   : > { %v3278_v11 = vld [vmem:[#allocation2 + $0x10] sm:$0xff]  ;;  %v3301_v14 = vld [vmem:[#allocation2 + $0x1d8] sm:$0xff]  ;;  %2110 = vst [vmem:[%s2918_s8 + $0x1e0] sm:$0xff] %v1612_v56  ;;  %v3345_v56 = vld [vmem:[%s2911_s18] sm:$0xff] }
 0x1f9   : > { %v3286_v13 = vld [vmem:[#allocation2 + $0x130] sm:$0xff]  ;;  %3754 = vst [vmem:[#allocation43_spill] sm:$0xff] %v3301_v14  ;;  %v1600_v16 = vld [vmem:[#allocation2 + $0x18] sm:$0xff]  ;;  %v3371_v53 = vld [vmem:[%s2911_s18 + $0x28] sm:$0xff] }
 0x1fa   : > { %3753 = vst [vmem:[#allocation42_spill] sm:$0xff] %v3286_v13  ;;  %2098 = vst [vmem:[%s2918_s8 + $0x180] sm:$0xff] %v1600_v16  ;;  %v1609_v16 = vld [vmem:[#allocation2 + $0x128] sm:$0xff]  ;;  %v1610_v17 = vld [vmem:[#allocation2 + $0x78] sm:$0xff] }
 0x1fb   : > { %1147 = vrot.lane.b32.xlu1 %v3158_v36, %s2572_s26  ;;  %1145 = vrot.lane.b32.xlu0 %v3160_v37, %s2572_s26  ;;  %v1613_v54 = vld [vmem:[#allocation2 + $0x190] sm:$0xff]  ;;  %2107 = vst [vmem:[%s2918_s8 + $0x1c8] sm:$0xff] %v1609_v16  ;;  %2108 = vst [vmem:[%s2918_s8 + $0x1d0] sm:$0xff] %v1610_v17 }
 0x1fc   : > { %2111 = vst [vmem:[%s2918_s8 + $0x1e8] sm:$0xff] %v1613_v54  ;;  %v3342_v54 = vld [vmem:[%s2911_s18 + $0x10] sm:$0xff] }
 0x1fd   : > { %v3462_v40 = vld [vmem:[%s2911_s18 + $0x70] sm:$0xff] }
 0x1ff   : > { %1151 = vrot.lane.b32.xlu1 %v3206_v57, %s2572_s26  ;;  %1149 = vrot.lane.b32.xlu0 %v3208_v58, %s2572_s26 }
 0x203   : > { %1155 = vrot.lane.b32.xlu1 %v3214_v59, %s2572_s26  ;;  %1153 = vrot.lane.b32.xlu0 %v3216_v60, %s2572_s26 }
 0x207   : > { %1296 = vrot.lane.b32.xlu1 %v3222_v61, %s2572_s26  ;;  %1294 = vrot.lane.b32.xlu0 %v3224_v62, %s2572_s26 }
 0x20b   : > { %1300 = vrot.lane.b32.xlu1 %v3230_v63, %s2572_s26  ;;  %1298 = vrot.lane.b32.xlu0 %v3232_v0, %s2572_s26 }
 0x20f   : > { %1304 = vrot.lane.b32.xlu1 %v3238_v1, %s2572_s26  ;;  %1302 = vrot.lane.b32.xlu0 %v3240_v2, %s2572_s26 }
 0x213   : > { %1308 = vrot.lane.b32.xlu1 %v3246_v3, %s2572_s26  ;;  %1306 = vrot.lane.b32.xlu0 %v3248_v4, %s2572_s26 }
 0x217   : > { %1312 = vrot.lane.b32.xlu1 %v3254_v5, %s2572_s26  ;;  %1310 = vrot.lane.b32.xlu0 %v3256_v6, %s2572_s26 }
 0x21b   : > { %1316 = vrot.lane.b32.xlu1 %v3262_v7, %s2572_s26  ;;  %1314 = vrot.lane.b32.xlu0 %v3264_v8, %s2572_s26 }
 0x21f   : > { %1320 = vrot.lane.b32.xlu1 %v3270_v9, %s2572_s26  ;;  %1318 = vrot.lane.b32.xlu0 %v3272_v10, %s2572_s26 }
 0x223   : > { %1324 = vrot.lane.b32.xlu1 %v3278_v11, %s2572_s26  ;;  %1322 = vrot.lane.b32.xlu0 %v3280_v12, %s2572_s26 }
 0x227   : > { %1467 = vrot.lane.b32.xlu1 %v3286_v13, %s2572_s26  ;;  %1465 = vrot.lane.b32.xlu0 %v3162_v38, %s2572_s26  ;;  %v1602_v38 = vld [vmem:[#allocation2 + $0x98] sm:$0xff] }
 0x228   : > { %2100 = vst [vmem:[%s2918_s8 + $0x190] sm:$0xff] %v1602_v38  ;;  %v1611_v38 = vld [vmem:[#allocation2 + $0xd0] sm:$0xff] }
 0x229   : > { %2109 = vst [vmem:[%s2918_s8 + $0x1d8] sm:$0xff] %v1611_v38 }
 0x22b   : > { %1471 = vrot.lane.b32.xlu1 %v3164_v39, %s2572_s26  ;;  %1469 = vrot.lane.b32.xlu0 %v1431_v42, %s2572_s26  ;;  %v3305_v39 = vld [vmem:[#allocation2 + $0x68] sm:$0xff] }
 0x22c   : > { %3756 = vst [vmem:[#allocation45_spill] sm:$0xff] %v3305_v39  ;;  %v3307_v42 = vld [vmem:[#allocation2 + $0xa8] sm:$0xff] }
 0x22d   : > { %3757 = vst [vmem:[#allocation46_spill] sm:$0xff] %v3307_v42 }
 0x22f   : > { %1475 = vrot.lane.b32.xlu1 %v1434_v43, %s2572_s26  ;;  %1473 = vrot.lane.b32.xlu0 %v1433_v44, %s2572_s26  ;;  %v1603_v43 = vld [vmem:[#allocation2 + $0x60] sm:$0xff] }
 0x230   : > { %v1604_v44 = vld [vmem:[#allocation2 + $0x140] sm:$0xff]  ;;  %2101 = vst [vmem:[%s2918_s8 + $0x198] sm:$0xff] %v1603_v43 }
 0x231   : > { %2102 = vst [vmem:[%s2918_s8 + $0x1a0] sm:$0xff] %v1604_v44  ;;  %v1615_v43 = vld [vmem:[#allocation2 + $0xa0] sm:$0xff]  ;;  %v3333_v44 = vld [vmem:[#allocation2 + $0x58] sm:$0xff] }
 0x232   : > { %2113 = vst [vmem:[%s2918_s8 + $0x1f8] sm:$0xff] %v1615_v43  ;;  %3758 = vst [vmem:[#allocation47_spill] sm:$0xff] %v3333_v44  ;;  %v3357_v43 = vld [vmem:[%s2911_s18 + $0x18] sm:$0xff] }
 0x233   : > { %1479 = vrot.lane.b32.xlu1 %v1436_v48, %s2572_s26  ;;  %1477 = vrot.lane.b32.xlu0 %v1435_v49, %s2572_s26  ;;  %v1605_v48 = vld [vmem:[#allocation2 + $0x28] sm:$0xff]  ;;  %v1606_v49 = vld [vmem:[#allocation2 + $0x30] sm:$0xff] }
 0x234   : > { %2103 = vst [vmem:[%s2918_s8 + $0x1a8] sm:$0xff] %v1605_v48  ;;  %2104 = vst [vmem:[%s2918_s8 + $0x1b0] sm:$0xff] %v1606_v49  ;;  %v3335_v48 = vld [vmem:[#allocation2 + $0xc0] sm:$0xff]  ;;  %v1173_v49 = vmul.f32 %v3100_v19, %v3131_v26 }
 0x235   : > { %3759 = vst [vmem:[#allocation48_spill] sm:$0xff] %v3335_v48 }
 0x237   : > { %1483 = vrot.lane.b32.xlu1 %v1438_v50, %s2572_s26  ;;  %1481 = vrot.lane.b32.xlu0 %v1437_v55, %s2572_s26  ;;  %v1607_v50 = vld [vmem:[#allocation2 + $0x8] sm:$0xff] }
 0x238   : > { %v1608_v55 = vld [vmem:[#allocation2 + $0xc8] sm:$0xff]  ;;  %2105 = vst [vmem:[%s2918_s8 + $0x1b8] sm:$0xff] %v1607_v50 }
 0x239   : > { %2106 = vst [vmem:[%s2918_s8 + $0x1c0] sm:$0xff] %v1608_v55  ;;  %v3352_v50 = vld [vmem:[%s2904_s7 + $0x8] sm:$0xff] }
 0x23a   : > { %v1174_v19 = vmul.f32 %v3108_v21, %v3352_v50  ;;  %v1178_v21 = vmul.f32 %v3114_v22, %v3144_v31  ;;  %v3388_v22 = vld [vmem:[%s2911_s18 + $0x30] sm:$0xff] }
 0x23b   : > { %1487 = vrot.lane.b32.xlu1 %v3301_v14, %s2572_s26  ;;  %1485 = vrot.lane.b32.xlu0 %v3303_v15, %s2572_s26  ;;  %v1614_v15 = vld [vmem:[#allocation2 + $0x1c0] sm:$0xff] }
 0x23c   : > { %2112 = vst [vmem:[%s2918_s8 + $0x1f0] sm:$0xff] %v1614_v15  ;;  %v1175_v15 = vmul.f32 %v3098_v18, %v3138_v29  ;;  %v1176_v18 = vmul.f32 %v3106_v20, %v3141_v30  ;;  %v3374_v20 = vld [vmem:[%s2911_s18 + $0x20] sm:$0xff] }
 0x23f   : > { %1491 = vrot.lane.b32.xlu1 %v3305_v39, %s2572_s26  ;;  %1489 = vrot.lane.b32.xlu0 %v3307_v42, %s2572_s26 }
 0x243   : > { %1495 = vrot.lane.b32.xlu1 %v3333_v44, %s2572_s26  ;;  %1493 = vrot.lane.b32.xlu0 %v3335_v48, %s2572_s26  ;;  %v3360_v48 = vld [vmem:[%s2911_s18 + $0x8] sm:$0xff] }
 0x259   : > { %v1130_v55 = vpop.permute.xlu1 %1129  ;;  %v1126_v16 = vpop.permute.xlu0 %1125 }
 0x25a   : > { %v1191_v17 = vmul.f32 %v1130_v55, %v3342_v54  ;;  %v1189_v38 = vmul.f32 %v1126_v16, %v3345_v56 }
 0x25c   : > { %v1207_v44 = vadd.f32 %v1191_v17, %v1175_v15  ;;  %v1205_v42 = vadd.f32 %v1189_v38, %v1173_v49  ;;  %v1177_v15 = vmul.f32 %v3116_v23, %v3147_v32  ;;  %v3385_v38 = vld [vmem:[%s2911_s18 + $0x38] sm:$0xff]  ;;  %v1180_v23 = vmul.f32 %v3122_v24, %v3150_v33  ;;  %v3399_v24 = vld [vmem:[%s2911_s18 + $0x48] sm:$0xff] }
 0x25d   : > { %v1132_v39 = vpop.permute.xlu1 %1131  ;;  %v1128_v14 = vpop.permute.xlu0 %1127 }
 0x25e   : > { %1223 = vst [vmem:[%s2918_s8 + $0x10] sm:$0xff] %v1207_v44  ;;  %1221 = vst [vmem:[%s2918_s8] sm:$0xff] %v1205_v42  ;;  %v1192_v55 = vmul.f32 %v1132_v39, %v3357_v43  ;;  %v1190_v16 = vmul.f32 %v1128_v14, %v3360_v48 }
 0x260   : > { %v1208_v49 = vadd.f32 %v1192_v55, %v1176_v18  ;;  %v1206_v44 = vadd.f32 %v1190_v16, %v1174_v19  ;;  %v1179_v18 = vmul.f32 %v3124_v25, %v3153_v34  ;;  %v1182_v25 = vmul.f32 %v3133_v27, %v3156_v35 }
 0x261   : > { %v1136_v42 = vpop.permute.xlu1 %1135  ;;  %v1134_v17 = vpop.permute.xlu0 %1133 }
 0x262   : > { %1224 = vst [vmem:[%s2918_s8 + $0x18] sm:$0xff] %v1208_v49  ;;  %1222 = vst [vmem:[%s2918_s8 + $0x8] sm:$0xff] %v1206_v44  ;;  %v1194_v14 = vmul.f32 %v1136_v42, %v3371_v53  ;;  %v1193_v39 = vmul.f32 %v1134_v17, %v3374_v20  ;;  %v3402_v17 = vld [vmem:[%s2911_s18 + $0x40] sm:$0xff] }
 0x264   : > { %v1210_v19 = vadd.f32 %v1194_v14, %v1178_v21  ;;  %v1209_v55 = vadd.f32 %v1193_v39, %v1177_v15  ;;  %v1181_v21 = vmul.f32 %v3135_v28, %v3188_v51  ;;  %v3409_v39 = vld [vmem:[%s2904_s7 + $0x58] sm:$0xff] }
 0x265   : > { %v1140_v16 = vpop.permute.xlu1 %1139  ;;  %v1138_v49 = vpop.permute.xlu0 %1137  ;;  %v3419_v28 = vld [vmem:[%s2911_s18 + $0x58] sm:$0xff] }
 0x266   : > { %1226 = vst [vmem:[%s2918_s8 + $0x28] sm:$0xff] %v1210_v19  ;;  %1225 = vst [vmem:[%s2918_s8 + $0x20] sm:$0xff] %v1209_v55  ;;  %v1196_v44 = vmul.f32 %v1140_v16, %v3385_v38  ;;  %v1195_v42 = vmul.f32 %v1138_v49, %v3388_v22  ;;  %v3412_v19 = vld [vmem:[%s2904_s7 + $0x50] sm:$0xff] }
 0x268   : > { %v1212_v15 = vadd.f32 %v1196_v44, %v1180_v23  ;;  %v1211_v14 = vadd.f32 %v1195_v42, %v1179_v18  ;;  %v3422_v23 = vld [vmem:[%s2911_s18 + $0x50] sm:$0xff]  ;;  %v1184_v18 = vmul.f32 %v3158_v36, %v3409_v39  ;;  %v1183_v44 = vmul.f32 %v3160_v37, %v3412_v19  ;;  %v3439_v37 = vld [vmem:[%s2911_s18 + $0x68] sm:$0xff] }
 0x269   : > { %v1144_v55 = vpop.permute.xlu1 %1143  ;;  %v1142_v16 = vpop.permute.xlu0 %1141 }
 0x26a   : > { %1228 = vst [vmem:[%s2918_s8 + $0x38] sm:$0xff] %v1212_v15  ;;  %1227 = vst [vmem:[%s2918_s8 + $0x30] sm:$0xff] %v1211_v14  ;;  %v1198_v49 = vmul.f32 %v1144_v55, %v3399_v24  ;;  %v1197_v27 = vmul.f32 %v1142_v16, %v3402_v17  ;;  %v3429_v14 = vld [vmem:[%s2904_s7 + $0x68] sm:$0xff]  ;;  %v3432_v55 = vld [vmem:[%s2904_s7 + $0x60] sm:$0xff] }
 0x26c   : > { %v1214_v42 = vadd.f32 %v1198_v49, %v1182_v25  ;;  %v1213_v15 = vadd.f32 %v1197_v27, %v1181_v21  ;;  %v3442_v25 = vld [vmem:[%s2911_s18 + $0x60] sm:$0xff]  ;;  %v1186_v21 = vmul.f32 %v3206_v57, %v3429_v14  ;;  %v1185_v49 = vmul.f32 %v3208_v58, %v3432_v55  ;;  %v3459_v57 = vld [vmem:[%s2911_s18 + $0x78] sm:$0xff] }
 0x26d   : > { %v1148_v16 = vpop.permute.xlu1 %1147  ;;  %v1146_v52 = vpop.permute.xlu0 %1145 }
 0x26e   : > { %1230 = vst [vmem:[%s2918_s8 + $0x48] sm:$0xff] %v1214_v42  ;;  %1229 = vst [vmem:[%s2918_s8 + $0x40] sm:$0xff] %v1213_v15  ;;  %v1200_v47 = vmul.f32 %v1148_v16, %v3419_v28  ;;  %v1199_v36 = vmul.f32 %v1146_v52, %v3422_v23  ;;  %v3449_v42 = vld [vmem:[%s2904_s7 + $0x78] sm:$0xff]  ;;  %v3452_v15 = vld [vmem:[%s2904_s7 + $0x70] sm:$0xff] }
 0x26f   : > { %v1187_v58 = vmul.f32 %v3216_v60, %v3452_v15 }
 0x270   : > { %v1216_v27 = vadd.f32 %v1200_v47, %v1184_v18  ;;  %v1215_v46 = vadd.f32 %v1199_v36, %v1183_v44  ;;  %v1188_v47 = vmul.f32 %v3214_v59, %v3449_v42  ;;  %v1342_v59 = vmul.f32 %v3224_v62, %v3131_v26 }
 0x271   : > { %v1152_v52 = vpop.permute.xlu1 %1151  ;;  %v1150_v16 = vpop.permute.xlu0 %1149 }
 0x272   : > { %1232 = vst [vmem:[%s2918_s8 + $0x58] sm:$0xff] %v1216_v27  ;;  %1231 = vst [vmem:[%s2918_s8 + $0x50] sm:$0xff] %v1215_v46  ;;  %v1202_v45 = vmul.f32 %v1152_v52, %v3439_v37  ;;  %v1201_v41 = vmul.f32 %v1150_v16, %v3442_v25  ;;  %v1343_v16 = vmul.f32 %v3222_v61, %v3352_v50 }
 0x273   : > { %v1344_v61 = vmul.f32 %v3232_v0, %v3138_v29 }
 0x274   : > { %v1218_v18 = vadd.f32 %v1202_v45, %v1186_v21  ;;  %v1217_v44 = vadd.f32 %v1201_v41, %v1185_v49 }
 0x275   : > { %v1156_v36 = vpop.permute.xlu1 %1155  ;;  %v1154_v46 = vpop.permute.xlu0 %1153 }
 0x276   : > { %1234 = vst [vmem:[%s2918_s8 + $0x68] sm:$0xff] %v1218_v18  ;;  %1233 = vst [vmem:[%s2918_s8 + $0x60] sm:$0xff] %v1217_v44  ;;  %v1204_v27 = vmul.f32 %v1156_v36, %v3459_v57  ;;  %v1203_v52 = vmul.f32 %v1154_v46, %v3462_v40  ;;  %v1345_v18 = vmul.f32 %v3230_v63, %v3141_v30 }
 0x277   : > { %v1347_v36 = vmul.f32 %v3238_v1, %v3144_v31  ;;  %v1346_v30 = vmul.f32 %v3240_v2, %v3147_v32  ;;  %v1348_v31 = vmul.f32 %v3248_v4, %v3153_v34 }
 0x278   : > { %v1220_v60 = vadd.f32 %v1204_v27, %v1188_v47  ;;  %v1219_v13 = vadd.f32 %v1203_v52, %v1187_v58 }
 0x279   : > { %v1297_v45 = vpop.permute.xlu1 %1296  ;;  %v1295_v41 = vpop.permute.xlu0 %1294 }
 0x27a   : > { %1236 = vst [vmem:[%s2918_s8 + $0x78] sm:$0xff] %v1220_v60  ;;  %1235 = vst [vmem:[%s2918_s8 + $0x70] sm:$0xff] %v1219_v13  ;;  %v1359_v21 = vmul.f32 %v1297_v45, %v3360_v48  ;;  %v1358_v49 = vmul.f32 %v1295_v41, %v3345_v56  ;;  %v1351_v41 = vmul.f32 %v3254_v5, %v3156_v35 }
 0x27b   : > { %v1352_v35 = vmul.f32 %v3264_v8, %v3412_v19 }
 0x27c   : > { %v1375_v26 = vadd.f32 %v1359_v21, %v1343_v16  ;;  %v1374_v62 = vadd.f32 %v1358_v49, %v1342_v59  ;;  %v1349_v16 = vmul.f32 %v3246_v3, %v3150_v33  ;;  %v1350_v33 = vmul.f32 %v3256_v6, %v3188_v51 }
 0x27d   : > { %v1301_v47 = vpop.permute.xlu1 %1300  ;;  %v1299_v58 = vpop.permute.xlu0 %1298 }
 0x27e   : > { %2019 = vst [vmem:[%s2918_s8 + $0x88] sm:$0xff] %v1375_v26  ;;  %2018 = vst [vmem:[%s2918_s8 + $0x80] sm:$0xff] %v1374_v62  ;;  %v1361_v13 = vmul.f32 %v1301_v47, %v3357_v43  ;;  %v1360_v44 = vmul.f32 %v1299_v58, %v3342_v54  ;;  %v1355_v58 = vmul.f32 %v3270_v9, %v3429_v14 }
 0x27f   : > { %v1356_v9 = vmul.f32 %v3280_v12, %v3452_v15 }
 0x280   : > { %v1377_v29 = vadd.f32 %v1361_v13, %v1345_v18  ;;  %v1376_v63 = vadd.f32 %v1360_v44, %v1344_v61  ;;  %v1353_v61 = vmul.f32 %v3262_v7, %v3409_v39  ;;  %v1354_v7 = vmul.f32 %v3272_v10, %v3432_v55 }
 0x281   : > { %v1305_v0 = vpop.permute.xlu1 %1304  ;;  %v1303_v46 = vpop.permute.xlu0 %1302 }
 0x282   : > { %2021 = vst [vmem:[%s2918_s8 + $0x98] sm:$0xff] %v1377_v29  ;;  %2020 = vst [vmem:[%s2918_s8 + $0x90] sm:$0xff] %v1376_v63  ;;  %v1363_v27 = vmul.f32 %v1305_v0, %v3371_v53  ;;  %v1362_v52 = vmul.f32 %v1303_v46, %v3374_v20  ;;  %v1357_v63 = vmul.f32 %v3278_v11, %v3449_v42 }
 0x284   : > { %v1379_v32 = vadd.f32 %v1363_v27, %v1347_v36  ;;  %v1378_v1 = vadd.f32 %v1362_v52, %v1346_v30 }
 0x285   : > { %v1309_v2 = vpop.permute.xlu1 %1308  ;;  %v1307_v59 = vpop.permute.xlu0 %1306 }
 0x286   : > { %2023 = vst [vmem:[%s2918_s8 + $0xa8] sm:$0xff] %v1379_v32  ;;  %2022 = vst [vmem:[%s2918_s8 + $0xa0] sm:$0xff] %v1378_v1  ;;  %v1365_v60 = vmul.f32 %v1309_v2, %v3385_v38  ;;  %v1364_v45 = vmul.f32 %v1307_v59, %v3388_v22 }
 0x288   : > { %v1381_v34 = vadd.f32 %v1365_v60, %v1349_v16  ;;  %v1380_v3 = vadd.f32 %v1364_v45, %v1348_v31  ;;  %v3760_v31 = vld [vmem:[#allocation42_spill] sm:$0xff] }
 0x289   : > { %v1313_v4 = vpop.permute.xlu1 %1312  ;;  %v1311_v21 = vpop.permute.xlu0 %1310  ;;  %v1514_v32 = vmul.f32 %v3760_v31, %v3352_v50  ;;  %v3773_v31 = vld [vmem:[#allocation46_spill] sm:$0xff] }
 0x28a   : > { %2025 = vst [vmem:[%s2918_s8 + $0xb8] sm:$0xff] %v1381_v34  ;;  %2024 = vst [vmem:[%s2918_s8 + $0xb0] sm:$0xff] %v1380_v3  ;;  %v1367_v49 = vmul.f32 %v1313_v4, %v3399_v24  ;;  %v1366_v18 = vmul.f32 %v1311_v21, %v3402_v17  ;;  %v3762_v21 = vld [vmem:[#allocation34_spill] sm:$0xff] }
 0x28c   : > { %v1383_v51 = vadd.f32 %v1367_v49, %v1351_v41  ;;  %v1382_v5 = vadd.f32 %v1366_v18, %v1350_v33  ;;  %v3761_v41 = vld [vmem:[#allocation33_spill] sm:$0xff]  ;;  %v3763_v18 = vld [vmem:[#allocation35_spill] sm:$0xff] }
 0x28d   : > { %v1317_v6 = vpop.permute.xlu1 %1316  ;;  %v1315_v26 = vpop.permute.xlu0 %1314 }
 0x28e   : > { %2027 = vst [vmem:[%s2918_s8 + $0xc8] sm:$0xff] %v1383_v51  ;;  %2026 = vst [vmem:[%s2918_s8 + $0xc0] sm:$0xff] %v1382_v5  ;;  %v1369_v62 = vmul.f32 %v1317_v6, %v3419_v28  ;;  %v1368_v47 = vmul.f32 %v1315_v26, %v3422_v23  ;;  %v3764_v5 = vld [vmem:[#allocation36_spill] sm:$0xff]  ;;  %v3765_v26 = vld [vmem:[#allocation37_spill] sm:$0xff] }
 0x290   : > { %v1385_v8 = vadd.f32 %v1369_v62, %v1353_v61  ;;  %v1384_v13 = vadd.f32 %v1368_v47, %v1352_v35 }
 0x291   : > { %v1321_v44 = vpop.permute.xlu1 %1320  ;;  %v1319_v36 = vpop.permute.xlu0 %1318 }
 0x292   : > { %2029 = vst [vmem:[%s2918_s8 + $0xd8] sm:$0xff] %v1385_v8  ;;  %2028 = vst [vmem:[%s2918_s8 + $0xd0] sm:$0xff] %v1384_v13  ;;  %v1371_v30 = vmul.f32 %v1321_v44, %v3439_v37  ;;  %v1370_v29 = vmul.f32 %v1319_v36, %v3442_v25  ;;  %v3767_v13 = vld [vmem:[#allocation39_spill] sm:$0xff] }
 0x294   : > { %v1387_v10 = vadd.f32 %v1371_v30, %v1355_v58  ;;  %v1386_v0 = vadd.f32 %v1370_v29, %v1354_v7  ;;  %v3766_v7 = vld [vmem:[#allocation38_spill] sm:$0xff]  ;;  %v3768_v29 = vld [vmem:[#allocation43_spill] sm:$0xff] }
 0x295   : > { %v1325_v46 = vpop.permute.xlu1 %1324  ;;  %v1323_v27 = vpop.permute.xlu0 %1322 }
 0x296   : > { %2031 = vst [vmem:[%s2918_s8 + $0xe8] sm:$0xff] %v1387_v10  ;;  %2030 = vst [vmem:[%s2918_s8 + $0xe0] sm:$0xff] %v1386_v0  ;;  %v1373_v52 = vmul.f32 %v1325_v46, %v3459_v57  ;;  %v1372_v16 = vmul.f32 %v1323_v27, %v3462_v40  ;;  %v3771_v0 = vld [vmem:[#allocation41_spill] sm:$0xff] }
 0x298   : > { %v1389_v11 = vadd.f32 %v1373_v52, %v1357_v63  ;;  %v1388_v1 = vadd.f32 %v1372_v16, %v1356_v9  ;;  %v1524_v63 = vmul.f32 %v3768_v29, %v3409_v39  ;;  %v3770_v9 = vld [vmem:[#allocation40_spill] sm:$0xff]  ;;  %v3772_v16 = vld [vmem:[#allocation45_spill] sm:$0xff] }
 0x299   : > { %v1468_v2 = vpop.permute.xlu1 %1467  ;;  %v1466_v59 = vpop.permute.xlu0 %1465  ;;  %v1526_v39 = vmul.f32 %v3772_v16, %v3429_v14 }
 0x29a   : > { %2033 = vst [vmem:[%s2918_s8 + $0xf8] sm:$0xff] %v1389_v11  ;;  %2032 = vst [vmem:[%s2918_s8 + $0xf0] sm:$0xff] %v1388_v1  ;;  %v1530_v12 = vmul.f32 %v1468_v2, %v3360_v48  ;;  %v1529_v60 = vmul.f32 %v1466_v59, %v3345_v56  ;;  %v3774_v59 = vld [vmem:[#allocation47_spill] sm:$0xff] }
 0x29b   : > { %v1528_v14 = vmul.f32 %v3774_v59, %v3449_v42 }
 0x29c   : > { %v1546_v45 = vadd.f32 %v1530_v12, %v1514_v32  ;;  %v1545_v33 = vadd.f32 %v1529_v60, %v3761_v41  ;;  %v3775_v12 = vld [vmem:[#allocation48_spill] sm:$0xff] }
 0x29d   : > { %v1472_v34 = vpop.permute.xlu1 %1471  ;;  %v1470_v3 = vpop.permute.xlu0 %1469  ;;  %v1527_v60 = vmul.f32 %v3775_v12, %v3452_v15 }
 0x29e   : > { %2051 = vst [vmem:[%s2918_s8 + $0x108] sm:$0xff] %v1546_v45  ;;  %2050 = vst [vmem:[%s2918_s8 + $0x100] sm:$0xff] %v1545_v33  ;;  %v1532_v50 = vmul.f32 %v1472_v34, %v3357_v43  ;;  %v1531_v4 = vmul.f32 %v1470_v3, %v3342_v54 }
 0x2a0   : > { %v1548_v49 = vadd.f32 %v1532_v50, %v3762_v21  ;;  %v1547_v61 = vadd.f32 %v1531_v4, %v3763_v18 }
 0x2a1   : > { %v1476_v48 = vpop.permute.xlu1 %1475  ;;  %v1474_v35 = vpop.permute.xlu0 %1473 }
 0x2a2   : > { %2053 = vst [vmem:[%s2918_s8 + $0x118] sm:$0xff] %v1548_v49  ;;  %2052 = vst [vmem:[%s2918_s8 + $0x110] sm:$0xff] %v1547_v61  ;;  %v1534_v56 = vmul.f32 %v1476_v48, %v3371_v53  ;;  %v1533_v51 = vmul.f32 %v1474_v35, %v3374_v20 }
 0x2a4   : > { %v1550_v6 = vadd.f32 %v1534_v56, %v3764_v5  ;;  %v1549_v43 = vadd.f32 %v1533_v51, %v3765_v26 }
 0x2a5   : > { %v1480_v62 = vpop.permute.xlu1 %1479  ;;  %v1478_v54 = vpop.permute.xlu0 %1477 }
 0x2a6   : > { %2055 = vst [vmem:[%s2918_s8 + $0x128] sm:$0xff] %v1550_v6  ;;  %2054 = vst [vmem:[%s2918_s8 + $0x120] sm:$0xff] %v1549_v43  ;;  %v1536_v47 = vmul.f32 %v1480_v62, %v3385_v38  ;;  %v1535_v58 = vmul.f32 %v1478_v54, %v3388_v22  ;;  %v3769_v38 = vld [vmem:[#allocation44_spill] sm:$0xff] }
 0x2a7   : > { %v1523_v22 = vmul.f32 %v3769_v38, %v3412_v19  ;;  %v1525_v19 = vmul.f32 %v3773_v31, %v3432_v55 }
 0x2a8   : > { %v1552_v8 = vadd.f32 %v1536_v47, %v3766_v7  ;;  %v1551_v53 = vadd.f32 %v1535_v58, %v3767_v13 }
 0x2a9   : > { %v1484_v44 = vpop.permute.xlu1 %1483  ;;  %v1482_v20 = vpop.permute.xlu0 %1481 }
 0x2aa   : > { %2057 = vst [vmem:[%s2918_s8 + $0x138] sm:$0xff] %v1552_v8  ;;  %2056 = vst [vmem:[%s2918_s8 + $0x130] sm:$0xff] %v1551_v53  ;;  %v1538_v36 = vmul.f32 %v1484_v44, %v3399_v24  ;;  %v1537_v30 = vmul.f32 %v1482_v20, %v3402_v17 }
 0x2ac   : > { %v1554_v10 = vadd.f32 %v1538_v36, %v3770_v9  ;;  %v1553_v46 = vadd.f32 %v1537_v30, %v3771_v0 }
 0x2ad   : > { %v1488_v27 = vpop.permute.xlu1 %1487  ;;  %v1486_v52 = vpop.permute.xlu0 %1485 }
 0x2ae   : > { %2059 = vst [vmem:[%s2918_s8 + $0x148] sm:$0xff] %v1554_v10  ;;  %2058 = vst [vmem:[%s2918_s8 + $0x140] sm:$0xff] %v1553_v46  ;;  %v1540_v24 = vmul.f32 %v1488_v27, %v3419_v28  ;;  %v1539_v17 = vmul.f32 %v1486_v52, %v3422_v23 }
 0x2b0   : > { %v1556_v32 = vadd.f32 %v1540_v24, %v1524_v63  ;;  %v1555_v11 = vadd.f32 %v1539_v17, %v1523_v22 }
 0x2b1   : > { %v1492_v1 = vpop.permute.xlu1 %1491  ;;  %v1490_v2 = vpop.permute.xlu0 %1489 }
 0x2b2   : > { %2061 = vst [vmem:[%s2918_s8 + $0x158] sm:$0xff] %v1556_v32  ;;  %2060 = vst [vmem:[%s2918_s8 + $0x150] sm:$0xff] %v1555_v11  ;;  %v1542_v28 = vmul.f32 %v1492_v1, %v3439_v37  ;;  %v1541_v23 = vmul.f32 %v1490_v2, %v3442_v25 }
 0x2b4   : > { %v1558_v55 = vadd.f32 %v1542_v28, %v1526_v39  ;;  %v1557_v45 = vadd.f32 %v1541_v23, %v1525_v19 }
 0x2b5   : > { %v1496_v41 = vpop.permute.xlu1 %1495  ;;  %v1494_v33 = vpop.permute.xlu0 %1493 }
 0x2b6   : > { %2063 = vst [vmem:[%s2918_s8 + $0x168] sm:$0xff] %v1558_v55  ;;  %2062 = vst [vmem:[%s2918_s8 + $0x160] sm:$0xff] %v1557_v45  ;;  %v1544_v34 = vmul.f32 %v1496_v41, %v3459_v57  ;;  %v1543_v3 = vmul.f32 %v1494_v33, %v3462_v40 }
 0x2b8   : > { %v1560_v50 = vadd.f32 %v1544_v34, %v1528_v14  ;;  %v1559_v37 = vadd.f32 %v1543_v3, %v1527_v60 }
 0x2ba   : > { %2065 = vst [vmem:[%s2918_s8 + $0x178] sm:$0xff] %v1560_v50  ;;  %2064 = vst [vmem:[%s2918_s8 + $0x170] sm:$0xff] %v1559_v37 }
 0x2bb PF: > { %s1771_s10 = scalar_lea.sflag [#allocation5], %s2901_s28 }
 0x2bc   : > { %s3776_s6 = sld [smem:[#allocation23_spill]]  ;;  %s1799_s9 = sshll.u32 %s2918_s8, 4  ;;  %s1800_s9 = int_to_ptr.vmem [resolvable:$true] %s1799_s9 }
 0x2bd   : > { %s3777_s19 = sld [smem:[#allocation24_spill]]  ;;  %s2573_s7 = smov 2048  }
 0x2be   : > { %s3778_s11 = sld [smem:[#allocation51_spill]]  ;;  %s2574_s5 = smov 8192  }
 0x2bf   : > { %2131 = sst [smem:[#allocation13]] (%p2832_p0), %s2573_s7  ;;  %s2575_s18 = smov 16  }
 0x2c0   : > { %2132 = sst [smem:[#allocation13 + $0x1]] (%p2832_p0), %s2574_s5  ;;  %s2576_s24 = smov 128  }
 0x2c1   : > { %2133 = sst [smem:[#allocation13 + $0x2]] (%p2832_p0), %s2575_s18  ;;  %s2577_s8 = smov 8  }
 0x2c2   : > { %s2115_s0 = sshll.u32 %s3776_s6, 4  ;;  %2134 = sst [smem:[#allocation13 + $0x3]] (%p2832_p0), %s2576_s24 }
 0x2c3   : > { %s2116_s1 = sshll.u32 %s3777_s19, 5  ;;  %2135 = sst [smem:[#allocation13 + $0x4]] (%p2832_p0), %s2576_s24 }
 0x2c4   : > { %s1784_s14 = sadd.s32 %s2116_s1, %s2115_s0  ;;  %2136 = sst [smem:[#allocation13 + $0x5]] (%p2832_p0), %s2577_s8 }
 0x2c5   : > { %s2117_s12 = sshll.u32 %s1784_s14, 7  ;;  %s2578_s4 = smov 131072  }
 0x2c6   : > { %s1788_s28 = scalar_lea.hbm %s3778_s11, %s2117_s12  ;;  %s2579_s21 = smov 0  }
 0x2c7   : > { %2137 = dma.general (%p2832_p0), %s1800_s9, 8192, %s1788_s28, %s1771_s10, %s2578_s4, [#allocation13], %s2579_s21, 0  }
 0x2c8 PF: > { %p2157_p13 = scmp.ge.s32.totalorder %s2559_s30, 2  ;;  %s1827_s26 = sand.u32 1, %s2499_s15  }
 0x2c9   : > { %p3779_p3 = scmp.ne.s32.totalorder %s3735_s23, 0  ;;  %s1828_s6 = scalar_lea.sflag [#allocation5], %s1827_s26 }
 0x2cb   : > { %p2153_p2 = pnand %p2157_p13, %p3779_p3 }
 0x2cd   : > { %p2154_p4 = pneg %p2153_p2 }
 0x2cf   : > { %2494 = dma.done.wait (%p2154_p4), %s1828_s6, 8192  }
 0x2d0   : > { %2496 = vsyncadd (%p2154_p4), %s1828_s6, 4294959104  ;;  %s26_s30 = sadd.s32 1, %s2559_s30   ;;  %s3781_s18 = sld [smem:[#allocation19_spill]] }
 0x2d1   : > { %p3619_p12 = scmp.ge.s32.totalorder %s26_s30, 10   ;;  %s3782_s20 = sld [smem:[#allocation20_spill]] }
 0x2d2   : > { %s3783_s10 = sld [smem:[#allocation29_spill]]  ;;  %s3791_s15 = smov %s2503_s16 }
 0x2d3   : > { %s3784_s0 = sld [smem:[#allocation21_spill]]  ;;  %s3793_s16 = smov %s2507_s17 }
 0x2d4   : > { %s3785_s23 = sld [smem:[#allocation32_spill]]  ;;  %s3794_s17 = smov %s2813_s25 }
 0x2d5   : > { %s3786_s24 = sld [smem:[#allocation25_spill]]  ;;  %s3797_s21 = smov %s2527_s22 }
 0x2d6   : > { %s3787_s1 = sld [smem:[#allocation26_spill]]  ;;  %s3800_s26 = smov %s2555_s29 }
 0x2d7   : > { %s3788_s27 = sld [smem:[#allocation27_spill]]  ;;  %s3795_s19 = smov %s3782_s20 }
 0x2d8   : > { %s3789_s28 = sld [smem:[#allocation28_spill]]  ;;  %s3796_s20 = smov %s3783_s10 }
 0x2d9   : > { %s3790_s14 = sld [smem:[#allocation30_spill]]  ;;  %s3798_s22 = smov %s3784_s0 }
 0x2db   :  { %25 = sbr.rel (!%p3619_p12) target bundleno = 19 (0x13), region = 169 }
 0x2dc   : > { %s3799_s25 = smov %s3787_s1 }
 0x2df   : > { %s3801_s29 = smov %s3790_s14 }
 0x2e0   :  { %1833 = vsyncpa [#allocation4], 1 }
 0x2e1   :  { %1835 = vsyncpa [#allocation4 + $0x1], 1 }
 0x2e2   :  { %1836 = vsyncpa [#allocation7], 1 }
 0x2e3   :  { %1838 = vsyncpa [#allocation7 + $0x1], 1 }
 0x2e4   :  { %1839 = vsyncpa [#allocation10], 1 }
 0x2e5   :  { %1841 = vsyncpa [#allocation10 + $0x1], 1 }
 0x2e6   :  { %1842 = vsyncpa [#allocation5], 1 }
 0x2e7   :  { %1844 = vsyncpa [#allocation5 + $0x1], 1 }

</bundles_post_ra>
